<compile_context>
chip_gen: v5e
topology: v5e:2x2
jax: 0.10.0
libtpu: 0.0.40
codegen_flags: <defaults>
</compile_context>

<pallas_src>
import functools
import math

import jax
import jax.numpy as jnp
from jax import lax
from jax.experimental import pallas as pl
from jax.experimental.pallas import tpu as pltpu


def _lstm_encoder_kernel(num_layers, seq_len, batch, hidden_size, compute_dtype,
                         x_ref, *refs):
    """refs = [w_ih_0, w_hh_0, b_0] + [w_cat_l, b_l]*(L-1) + [head_w, head_b]
              + [out_ref, h_seq_scratch]."""
    T, Bp, H = seq_len, batch, hidden_size
    f32 = jnp.float32

    w_ih0_ref, w_hh0_ref, b0_ref = refs[0], refs[1], refs[2]
    pos = 3
    upper_refs = []
    for _ in range(num_layers - 1):
        upper_refs.append((refs[pos], refs[pos + 1]))
        pos += 2
    head_w_ref, head_b_ref = refs[pos], refs[pos + 1]
    out_ref = refs[pos + 2]
    h_seq_ref = refs[pos + 3]

    # ---- Layer 0: whole-sequence input projection hoisted off the serial chain.
    z0_all = jnp.dot(x_ref[...].astype(compute_dtype), w_ih0_ref[...],
                     preferred_element_type=f32) + b0_ref[...]          # (T*Bp, 4H)
    w_hh0 = w_hh0_ref[...]

    # Hoist upper-layer weights and broadcast biases out of the unrolled loop
    # (JAX does not CSE broadcast_in_dim).
    upper_w = [w_ref[...] for (w_ref, _) in upper_refs]                 # (2H, 4H)
    upper_b = [jnp.broadcast_to(b_ref[...], (Bp, 4 * H))
               for (_, b_ref) in upper_refs]

    def gate_update(z, c):
        # Gate columns pre-permuted to [i | f | o | g]; the g block's
        # pre-activation is pre-scaled by 2, so one sigmoid over all 4H lanes
        # covers every gate and g = 2*sigmoid(2 z_g) - 1 == tanh(z_g).
        sig = jax.nn.sigmoid(z)
        i_g = sig[:, :H]
        f_g = sig[:, H:2 * H]
        o_g = sig[:, 2 * H:3 * H]
        g_g = 2.0 * sig[:, 3 * H:] - 1.0
        c_new = f_g * c + i_g * g_g
        h_new = o_g * jnp.tanh(c_new)
        return h_new, c_new

    h_st = [jnp.zeros((Bp, H), f32) for _ in range(num_layers)]
    c_st = [jnp.zeros((Bp, H), f32) for _ in range(num_layers)]

    # Fully unrolled over time (T static).  Per step: layer 0 = one recurrent
    # MXU push (input projection pre-done); each upper layer = one fused MXU
    # push.  Upper layers depend only on the lower layer's h of the same step
    # plus their own previous state, so layer l step t overlaps with layer
    # l-1 step t+1 (wavefront) in the scheduler.
    for t in range(T):
        z0 = z0_all[t * Bp:(t + 1) * Bp, :] + jnp.dot(
            h_st[0].astype(compute_dtype), w_hh0, preferred_element_type=f32)
        h_st[0], c_st[0] = gate_update(z0, c_st[0])
        for l in range(1, num_layers):
            xin = jnp.concatenate([h_st[l - 1], h_st[l]], axis=1)      # (Bp, 2H)
            z = jnp.dot(xin.astype(compute_dtype), upper_w[l - 1],
                        preferred_element_type=f32) + upper_b[l - 1]
            h_st[l], c_st[l] = gate_update(z, c_st[l])
        # Aligned full-tile store of the top layer's h for this step.
        h_seq_ref[t * Bp:(t + 1) * Bp, :] = h_st[num_layers - 1]
        # TODO(synk): nn.LSTM inter-layer dropout is a train-time-only op; eval
        # semantics (no dropout) are implemented here.

    # ---- Post-LSTM ReLU + fused zero-padded (mu || log_sigma) head + ReLU.
    seq = jnp.maximum(h_seq_ref[...], 0.0)                              # (T*Bp, H)
    heads = jnp.dot(seq.astype(compute_dtype), head_w_ref[...],
                    preferred_element_type=f32) + head_b_ref[...]
    out_ref[...] = jnp.maximum(heads, 0.0)                              # (T*Bp, n_out)


def _permute_and_scale_gates(w):
    """PyTorch gate order [i, f, g, o] -> [i, f, o, g]; scale the g (cell) block's
    pre-activation by 2 so tanh can be recovered from one wide sigmoid."""
    wi, wf, wg, wo = jnp.split(w, 4, axis=-1)
    return jnp.concatenate([wi, wf, wo, 2.0 * wg], axis=-1)


def _default_use_bf16():
    kind = jax.devices()[0].device_kind.lower()
    return ("v6" in kind) or ("v7" in kind)   # bf16 VPU path only on v6e/v7x


def encoder_forward(x, params, use_bf16_weights=None):
    """x: (B, T, num_stocks) float32 (batch_first, like the PyTorch module).
    Returns (mu, log_sigma), each (B, T, num_factors)."""
    B, T, D = x.shape
    H = params["hidden_size"]
    F = params["num_factors"]
    L = params["num_layers"]
    if use_bf16_weights is None:
        use_bf16_weights = _default_use_bf16()
    cdt = jnp.bfloat16 if use_bf16_weights else jnp.float32

    Bp = max(8, ((B + 7) // 8) * 8)                       # pad batch to full sublane group
    n_out = max(128, ((2 * F + 127) // 128) * 128)        # lane-dense output slab

    # batch_first -> time-major, zero-pad batch, flatten: row index = t*Bp + b.
    x_tm = jnp.transpose(x, (1, 0, 2)).astype(jnp.float32)         # (T, B, D)
    x_tm = jnp.pad(x_tm, ((0, 0), (0, Bp - B), (0, 0)))            # (T, Bp, D)
    x_flat = x_tm.reshape(T * Bp, D)

    args = [x_flat]
    # Layer 0: w_ih / w_hh kept separate (input projection hoisted in-kernel).
    args += [_permute_and_scale_gates(params["w_ih_0"]).astype(cdt),
             _permute_and_scale_gates(params["w_hh_0"]).astype(cdt),
             _permute_and_scale_gates(params["b_0"]).astype(jnp.float32)]
    # Layers > 0: fuse [w_ih ; w_hh] -> (2H, 4H): one MXU push per serial step.
    for l in range(1, L):
        w_cat = jnp.concatenate(
            [_permute_and_scale_gates(params[f"w_ih_{l}"]),
             _permute_and_scale_gates(params[f"w_hh_{l}"])], axis=0)
        args += [w_cat.astype(cdt),
                 _permute_and_scale_gates(params[f"b_{l}"]).astype(jnp.float32)]
    # Fused, zero-padded (mu || log_sigma) head -> lane-dense output.
    head_w = jnp.concatenate([params["mu_w"], params["ls_w"]], axis=-1)   # (H, 2F)
    head_b = jnp.concatenate([params["mu_b"], params["ls_b"]], axis=-1)   # (1, 2F)
    head_w = jnp.pad(head_w, ((0, 0), (0, n_out - 2 * F))).astype(cdt)
    head_b = jnp.pad(head_b, ((0, 0), (0, n_out - 2 * F))).astype(jnp.float32)
    args += [head_w, head_b]

    # VMEM working-set guard (v7x: 64 MiB physical / 32 MiB scoped default).
    est_bytes = 4 * (T * Bp * (D + 4 * H + H + n_out)
                     + (D + H) * 4 * H + (L - 1) * 2 * H * 4 * H + H * n_out)
    if est_bytes > 24 * 2 ** 20:
        # TODO(synk): tile T*B with a "parallel" grid axis before this trips.
        raise NotImplementedError("working set too large for gridless VMEM-resident kernel")
    vmem_limit = int(min(48 * 2 ** 20, max(4 * 2 ** 20, 2 * est_bytes)))

    kernel = functools.partial(_lstm_encoder_kernel, L, T, Bp, H, cdt)
    vmem = pl.BlockSpec(memory_space=pltpu.MemorySpace.VMEM)

    heads = pl.pallas_call(
        kernel,
        out_shape=jax.ShapeDtypeStruct((T * Bp, n_out), jnp.float32),
        in_specs=[vmem] * len(args),
        out_specs=vmem,
        scratch_shapes=[pltpu.VMEM((T * Bp, H), jnp.float32)],
        compiler_params=pltpu.CompilerParams(vmem_limit_bytes=vmem_limit),
    )(*args)

    heads = heads.reshape(T, Bp, n_out)[:, :B, :2 * F].transpose(1, 0, 2)  # (B, T, 2F)
    return heads[..., :F], heads[..., F:]


def _reference_encoder(x, params):
    """Pure-JAX reference (unpermuted PyTorch gate order) for correctness checking."""
    B, T, _ = x.shape
    H = params["hidden_size"]
    L = params["num_layers"]
    seq = jnp.transpose(x, (1, 0, 2)).astype(jnp.float32)    # (T, B, D)
    for l in range(L):
        w_ih = params[f"w_ih_{l}"]
        w_hh = params[f"w_hh_{l}"]
        b = params[f"b_{l}"]

        def step(carry, x_t, w_ih=w_ih, w_hh=w_hh, b=b):
            h, c = carry
            z = x_t @ w_ih + h @ w_hh + b
            i = jax.nn.sigmoid(z[:, :H])
            f = jax.nn.sigmoid(z[:, H:2 * H])
            g = jnp.tanh(z[:, 2 * H:3 * H])
            o = jax.nn.sigmoid(z[:, 3 * H:])
            c = f * c + i * g
            h = o * jnp.tanh(c)
            return (h, c), h

        init = (jnp.zeros((B, H), jnp.float32), jnp.zeros((B, H), jnp.float32))
        _, seq = lax.scan(step, init, seq)
    out = jnp.maximum(seq, 0.0)
    mu = jnp.maximum(jnp.einsum("tbh,hf->tbf", out, params["mu_w"]) + params["mu_b"], 0.0)
    ls = jnp.maximum(jnp.einsum("tbh,hf->tbf", out, params["ls_w"]) + params["ls_b"], 0.0)
    return jnp.transpose(mu, (1, 0, 2)), jnp.transpose(ls, (1, 0, 2))


if __name__ == "__main__":
    # Small shapes consistent with the module's forward:
    #   batch_size=2, num_lags (seq)=8, num_stocks=4, hidden_size=32,
    #   num_factors=4, num_layers=2, dropout=0.0 (eval semantics).
    B, T, D, H, F, L = 2, 8, 4, 32, 4, 2

    key = jax.random.PRNGKey(0)
    keys = iter(jax.random.split(key, 3 * L + 5))
    bound = 1.0 / math.sqrt(H)   # PyTorch default LSTM/Linear-ish init scale

    params = {"hidden_size": H, "num_factors": F, "num_layers": L}
    for l in range(L):
        in_size = D if l == 0 else H
        params[f"w_ih_{l}"] = jax.random.uniform(
            next(keys), (in_size, 4 * H), jnp.float32, -bound, bound)
        params[f"w_hh_{l}"] = jax.random.uniform(
            next(keys), (H, 4 * H), jnp.float32, -bound, bound)
        params[f"b_{l}"] = jax.random.uniform(          # combined b_ih + b_hh
            next(keys), (1, 4 * H), jnp.float32, -bound, bound)
    params["mu_w"] = jax.random.uniform(next(keys), (H, F), jnp.float32, -bound, bound)
    params["mu_b"] = jax.random.uniform(next(keys), (1, F), jnp.float32, -bound, bound)
    params["ls_w"] = jax.random.uniform(next(keys), (H, F), jnp.float32, -bound, bound)
    params["ls_b"] = jax.random.uniform(next(keys), (1, F), jnp.float32, -bound, bound)

    x = jax.random.normal(next(keys), (B, T, D), jnp.float32)

    mu_ref, ls_ref = _reference_encoder(x, params)

    # Explicit f32-operand path (all generations): tight tolerance.
    mu32, ls32 = encoder_forward(x, params, use_bf16_weights=False)
    jax.block_until_ready((mu32, ls32))
    assert mu32.shape == (B, T, F) and ls32.shape == (B, T, F)
    assert bool(jnp.all(mu32 >= 0.0)) and bool(jnp.all(ls32 >= 0.0))     # ReLU heads
    assert bool(jnp.allclose(mu32, mu_ref, atol=5e-3, rtol=5e-3)), "mu mismatch (f32 path)"
    assert bool(jnp.allclose(ls32, ls_ref, atol=5e-3, rtol=5e-3)), "log_sigma mismatch (f32 path)"

    # Auto path: bf16 matmul operands on v6e/v7x, f32 elsewhere.
    mu, log_sigma = encoder_forward(x, params)
    jax.block_until_ready((mu, log_sigma))
    assert mu.shape == (B, T, F) and log_sigma.shape == (B, T, F)
    assert bool(jnp.all(mu >= 0.0)) and bool(jnp.all(log_sigma >= 0.0))
    tol = 2.5e-2 if _default_use_bf16() else 5e-3
    assert bool(jnp.allclose(mu, mu_ref, atol=tol, rtol=tol)), "mu mismatch (auto path)"
    assert bool(jnp.allclose(log_sigma, ls_ref, atol=tol, rtol=tol)), "log_sigma mismatch (auto path)"

    print("KERNEL_OK")
</pallas_src>

<mosaic_0001>
module attributes {stable_mosaic.version = 11 : i64} {
  func.func @_lstm_encoder_kernel(%arg0: memref<64x4xf32, #tpu.memory_space<vmem>>, %arg1: memref<4x128xf32, #tpu.memory_space<vmem>>, %arg2: memref<32x128xf32, #tpu.memory_space<vmem>>, %arg3: memref<1x128xf32, #tpu.memory_space<vmem>>, %arg4: memref<64x128xf32, #tpu.memory_space<vmem>>, %arg5: memref<1x128xf32, #tpu.memory_space<vmem>>, %arg6: memref<32x128xf32, #tpu.memory_space<vmem>>, %arg7: memref<1x128xf32, #tpu.memory_space<vmem>>, %arg8: memref<64x128xf32, #tpu.memory_space<vmem>>, %arg9: memref<64x32xf32, #tpu.memory_space<vmem>>) attributes {dimension_semantics = [], scalar_prefetch = 0 : i64, scratch_operands = 1 : i64, tpu.core_type = #tpu.core_type<tc>} {
    %c0 = arith.constant 0 : index
    %c0_0 = arith.constant 0 : index
    %0 = vector.load %arg0[%c0, %c0_0] : memref<64x4xf32, #tpu.memory_space<vmem>>, vector<64x4xf32>
    %c0_1 = arith.constant 0 : index
    %c0_2 = arith.constant 0 : index
    %1 = vector.load %arg1[%c0_1, %c0_2] : memref<4x128xf32, #tpu.memory_space<vmem>>, vector<4x128xf32>
    %cst = arith.constant dense<0.000000e+00> : vector<64x128xf32>
    %2 = tpu.matmul %0, %1, %cst {dimension_numbers = #tpu.dot_dimension_numbers<[1], [0], [0], [1], [0, 0, 1, 1], [], []>} : vector<64x4xf32>, vector<4x128xf32>, vector<64x128xf32> -> vector<64x128xf32>
    %c0_3 = arith.constant 0 : index
    %c0_4 = arith.constant 0 : index
    %3 = vector.load %arg3[%c0_3, %c0_4] : memref<1x128xf32, #tpu.memory_space<vmem>>, vector<1x128xf32>
    %4 = vector.broadcast %3 : vector<1x128xf32> to vector<64x128xf32>
    %5 = arith.addf %2, %4 : vector<64x128xf32>
    %c0_5 = arith.constant 0 : index
    %c0_6 = arith.constant 0 : index
    %6 = vector.load %arg2[%c0_5, %c0_6] : memref<32x128xf32, #tpu.memory_space<vmem>>, vector<32x128xf32>
    %c0_7 = arith.constant 0 : index
    %c0_8 = arith.constant 0 : index
    %7 = vector.load %arg4[%c0_7, %c0_8] : memref<64x128xf32, #tpu.memory_space<vmem>>, vector<64x128xf32>
    %c0_9 = arith.constant 0 : index
    %c0_10 = arith.constant 0 : index
    %8 = vector.load %arg5[%c0_9, %c0_10] : memref<1x128xf32, #tpu.memory_space<vmem>>, vector<1x128xf32>
    %9 = vector.shape_cast %8 : vector<1x128xf32> to vector<1x128xf32>
    %10 = vector.broadcast %9 : vector<1x128xf32> to vector<8x128xf32>
    %cst_11 = arith.constant 0.000000e+00 : f32
    %11 = vector.broadcast %cst_11 : f32 to vector<8x32xf32>
    %cst_12 = arith.constant 0.000000e+00 : f32
    %12 = vector.broadcast %cst_12 : f32 to vector<8x32xf32>
    %cst_13 = arith.constant 0.000000e+00 : f32
    %13 = vector.broadcast %cst_13 : f32 to vector<8x32xf32>
    %cst_14 = arith.constant 0.000000e+00 : f32
    %14 = vector.broadcast %cst_14 : f32 to vector<8x32xf32>
    %15 = vector.extract_strided_slice %5 {offsets = [0, 0], sizes = [8, 128], strides = [1, 1]} : vector<64x128xf32> to vector<8x128xf32>
    %cst_15 = arith.constant dense<0.000000e+00> : vector<8x128xf32>
    %16 = tpu.matmul %11, %6, %cst_15 {dimension_numbers = #tpu.dot_dimension_numbers<[1], [0], [0], [1], [0, 0, 1, 1], [], []>} : vector<8x32xf32>, vector<32x128xf32>, vector<8x128xf32> -> vector<8x128xf32>
    %17 = arith.addf %15, %16 : vector<8x128xf32>
    %18 = arith.negf %17 : vector<8x128xf32>
    %19 = math.exp %18 : vector<8x128xf32>
    %cst_16 = arith.constant 1.000000e+00 : f32
    %20 = vector.broadcast %cst_16 : f32 to vector<8x128xf32>
    %21 = arith.addf %20, %19 : vector<8x128xf32>
    %22 = arith.divf %20, %21 : vector<8x128xf32>
    %23 = vector.extract_strided_slice %22 {offsets = [0, 0], sizes = [8, 32], strides = [1, 1]} : vector<8x128xf32> to vector<8x32xf32>
    %24 = vector.extract_strided_slice %22 {offsets = [0, 32], sizes = [8, 32], strides = [1, 1]} : vector<8x128xf32> to vector<8x32xf32>
    %25 = vector.extract_strided_slice %22 {offsets = [0, 64], sizes = [8, 32], strides = [1, 1]} : vector<8x128xf32> to vector<8x32xf32>
    %26 = vector.extract_strided_slice %22 {offsets = [0, 96], sizes = [8, 32], strides = [1, 1]} : vector<8x128xf32> to vector<8x32xf32>
    %cst_17 = arith.constant 2.000000e+00 : f32
    %27 = vector.broadcast %cst_17 : f32 to vector<8x32xf32>
    %28 = arith.mulf %27, %26 : vector<8x32xf32>
    %cst_18 = arith.constant 1.000000e+00 : f32
    %29 = vector.broadcast %cst_18 : f32 to vector<8x32xf32>
    %30 = arith.subf %28, %29 : vector<8x32xf32>
    %31 = arith.mulf %24, %13 : vector<8x32xf32>
    %32 = arith.mulf %23, %30 : vector<8x32xf32>
    %33 = arith.addf %31, %32 : vector<8x32xf32>
    %34 = math.tanh %33 : vector<8x32xf32>
    %35 = arith.mulf %25, %34 : vector<8x32xf32>
    %36 = tpu.concatenate %35, %12 in 1 : vector<8x32xf32>, vector<8x32xf32> -> vector<8x64xf32>
    %cst_19 = arith.constant dense<0.000000e+00> : vector<8x128xf32>
    %37 = tpu.matmul %36, %7, %cst_19 {dimension_numbers = #tpu.dot_dimension_numbers<[1], [0], [0], [1], [0, 0, 1, 1], [], []>} : vector<8x64xf32>, vector<64x128xf32>, vector<8x128xf32> -> vector<8x128xf32>
    %38 = arith.addf %37, %10 : vector<8x128xf32>
    %39 = arith.negf %38 : vector<8x128xf32>
    %40 = math.exp %39 : vector<8x128xf32>
    %cst_20 = arith.constant 1.000000e+00 : f32
    %41 = vector.broadcast %cst_20 : f32 to vector<8x128xf32>
    %42 = arith.addf %41, %40 : vector<8x128xf32>
    %43 = arith.divf %41, %42 : vector<8x128xf32>
    %44 = vector.extract_strided_slice %43 {offsets = [0, 0], sizes = [8, 32], strides = [1, 1]} : vector<8x128xf32> to vector<8x32xf32>
    %45 = vector.extract_strided_slice %43 {offsets = [0, 32], sizes = [8, 32], strides = [1, 1]} : vector<8x128xf32> to vector<8x32xf32>
    %46 = vector.extract_strided_slice %43 {offsets = [0, 64], sizes = [8, 32], strides = [1, 1]} : vector<8x128xf32> to vector<8x32xf32>
    %47 = vector.extract_strided_slice %43 {offsets = [0, 96], sizes = [8, 32], strides = [1, 1]} : vector<8x128xf32> to vector<8x32xf32>
    %cst_21 = arith.constant 2.000000e+00 : f32
    %48 = vector.broadcast %cst_21 : f32 to vector<8x32xf32>
    %49 = arith.mulf %48, %47 : vector<8x32xf32>
    %cst_22 = arith.constant 1.000000e+00 : f32
    %50 = vector.broadcast %cst_22 : f32 to vector<8x32xf32>
    %51 = arith.subf %49, %50 : vector<8x32xf32>
    %52 = arith.mulf %45, %14 : vector<8x32xf32>
    %53 = arith.mulf %44, %51 : vector<8x32xf32>
    %54 = arith.addf %52, %53 : vector<8x32xf32>
    %55 = math.tanh %54 : vector<8x32xf32>
    %56 = arith.mulf %46, %55 : vector<8x32xf32>
    %c0_23 = arith.constant 0 : index
    %c0_24 = arith.constant 0 : index
    %57 = vector.load %arg9[%c0_23, %c0_24] : memref<64x32xf32, #tpu.memory_space<vmem>>, vector<8x32xf32>
    tpu.vector_store %arg9[%c0_23, %c0_24], %56 {strides = array<i32>} : memref<64x32xf32, #tpu.memory_space<vmem>>, vector<8x32xf32>,
    %58 = vector.extract_strided_slice %5 {offsets = [8, 0], sizes = [8, 128], strides = [1, 1]} : vector<64x128xf32> to vector<8x128xf32>
    %cst_25 = arith.constant dense<0.000000e+00> : vector<8x128xf32>
    %59 = tpu.matmul %35, %6, %cst_25 {dimension_numbers = #tpu.dot_dimension_numbers<[1], [0], [0], [1], [0, 0, 1, 1], [], []>} : vector<8x32xf32>, vector<32x128xf32>, vector<8x128xf32> -> vector<8x128xf32>
    %60 = arith.addf %58, %59 : vector<8x128xf32>
    %61 = arith.negf %60 : vector<8x128xf32>
    %62 = math.exp %61 : vector<8x128xf32>
    %cst_26 = arith.constant 1.000000e+00 : f32
    %63 = vector.broadcast %cst_26 : f32 to vector<8x128xf32>
    %64 = arith.addf %63, %62 : vector<8x128xf32>
    %65 = arith.divf %63, %64 : vector<8x128xf32>
    %66 = vector.extract_strided_slice %65 {offsets = [0, 0], sizes = [8, 32], strides = [1, 1]} : vector<8x128xf32> to vector<8x32xf32>
    %67 = vector.extract_strided_slice %65 {offsets = [0, 32], sizes = [8, 32], strides = [1, 1]} : vector<8x128xf32> to vector<8x32xf32>
    %68 = vector.extract_strided_slice %65 {offsets = [0, 64], sizes = [8, 32], strides = [1, 1]} : vector<8x128xf32> to vector<8x32xf32>
    %69 = vector.extract_strided_slice %65 {offsets = [0, 96], sizes = [8, 32], strides = [1, 1]} : vector<8x128xf32> to vector<8x32xf32>
    %cst_27 = arith.constant 2.000000e+00 : f32
    %70 = vector.broadcast %cst_27 : f32 to vector<8x32xf32>
    %71 = arith.mulf %70, %69 : vector<8x32xf32>
    %cst_28 = arith.constant 1.000000e+00 : f32
    %72 = vector.broadcast %cst_28 : f32 to vector<8x32xf32>
    %73 = arith.subf %71, %72 : vector<8x32xf32>
    %74 = arith.mulf %67, %33 : vector<8x32xf32>
    %75 = arith.mulf %66, %73 : vector<8x32xf32>
    %76 = arith.addf %74, %75 : vector<8x32xf32>
    %77 = math.tanh %76 : vector<8x32xf32>
    %78 = arith.mulf %68, %77 : vector<8x32xf32>
    %79 = tpu.concatenate %78, %56 in 1 : vector<8x32xf32>, vector<8x32xf32> -> vector<8x64xf32>
    %cst_29 = arith.constant dense<0.000000e+00> : vector<8x128xf32>
    %80 = tpu.matmul %79, %7, %cst_29 {dimension_numbers = #tpu.dot_dimension_numbers<[1], [0], [0], [1], [0, 0, 1, 1], [], []>} : vector<8x64xf32>, vector<64x128xf32>, vector<8x128xf32> -> vector<8x128xf32>
    %81 = arith.addf %80, %10 : vector<8x128xf32>
    %82 = arith.negf %81 : vector<8x128xf32>
    %83 = math.exp %82 : vector<8x128xf32>
    %cst_30 = arith.constant 1.000000e+00 : f32
    %84 = vector.broadcast %cst_30 : f32 to vector<8x128xf32>
    %85 = arith.addf %84, %83 : vector<8x128xf32>
    %86 = arith.divf %84, %85 : vector<8x128xf32>
    %87 = vector.extract_strided_slice %86 {offsets = [0, 0], sizes = [8, 32], strides = [1, 1]} : vector<8x128xf32> to vector<8x32xf32>
    %88 = vector.extract_strided_slice %86 {offsets = [0, 32], sizes = [8, 32], strides = [1, 1]} : vector<8x128xf32> to vector<8x32xf32>
    %89 = vector.extract_strided_slice %86 {offsets = [0, 64], sizes = [8, 32], strides = [1, 1]} : vector<8x128xf32> to vector<8x32xf32>
    %90 = vector.extract_strided_slice %86 {offsets = [0, 96], sizes = [8, 32], strides = [1, 1]} : vector<8x128xf32> to vector<8x32xf32>
    %cst_31 = arith.constant 2.000000e+00 : f32
    %91 = vector.broadcast %cst_31 : f32 to vector<8x32xf32>
    %92 = arith.mulf %91, %90 : vector<8x32xf32>
    %cst_32 = arith.constant 1.000000e+00 : f32
    %93 = vector.broadcast %cst_32 : f32 to vector<8x32xf32>
    %94 = arith.subf %92, %93 : vector<8x32xf32>
    %95 = arith.mulf %88, %54 : vector<8x32xf32>
    %96 = arith.mulf %87, %94 : vector<8x32xf32>
    %97 = arith.addf %95, %96 : vector<8x32xf32>
    %98 = math.tanh %97 : vector<8x32xf32>
    %99 = arith.mulf %89, %98 : vector<8x32xf32>
    %c8 = arith.constant 8 : index
    %c0_33 = arith.constant 0 : index
    %100 = vector.load %arg9[%c8, %c0_33] : memref<64x32xf32, #tpu.memory_space<vmem>>, vector<8x32xf32>
    tpu.vector_store %arg9[%c8, %c0_33], %99 {strides = array<i32>} : memref<64x32xf32, #tpu.memory_space<vmem>>, vector<8x32xf32>,
    %101 = vector.extract_strided_slice %5 {offsets = [16, 0], sizes = [8, 128], strides = [1, 1]} : vector<64x128xf32> to vector<8x128xf32>
    %cst_34 = arith.constant dense<0.000000e+00> : vector<8x128xf32>
    %102 = tpu.matmul %78, %6, %cst_34 {dimension_numbers = #tpu.dot_dimension_numbers<[1], [0], [0], [1], [0, 0, 1, 1], [], []>} : vector<8x32xf32>, vector<32x128xf32>, vector<8x128xf32> -> vector<8x128xf32>
    %103 = arith.addf %101, %102 : vector<8x128xf32>
    %104 = arith.negf %103 : vector<8x128xf32>
    %105 = math.exp %104 : vector<8x128xf32>
    %cst_35 = arith.constant 1.000000e+00 : f32
    %106 = vector.broadcast %cst_35 : f32 to vector<8x128xf32>
    %107 = arith.addf %106, %105 : vector<8x128xf32>
    %108 = arith.divf %106, %107 : vector<8x128xf32>
    %109 = vector.extract_strided_slice %108 {offsets = [0, 0], sizes = [8, 32], strides = [1, 1]} : vector<8x128xf32> to vector<8x32xf32>
    %110 = vector.extract_strided_slice %108 {offsets = [0, 32], sizes = [8, 32], strides = [1, 1]} : vector<8x128xf32> to vector<8x32xf32>
    %111 = vector.extract_strided_slice %108 {offsets = [0, 64], sizes = [8, 32], strides = [1, 1]} : vector<8x128xf32> to vector<8x32xf32>
    %112 = vector.extract_strided_slice %108 {offsets = [0, 96], sizes = [8, 32], strides = [1, 1]} : vector<8x128xf32> to vector<8x32xf32>
    %cst_36 = arith.constant 2.000000e+00 : f32
    %113 = vector.broadcast %cst_36 : f32 to vector<8x32xf32>
    %114 = arith.mulf %113, %112 : vector<8x32xf32>
    %cst_37 = arith.constant 1.000000e+00 : f32
    %115 = vector.broadcast %cst_37 : f32 to vector<8x32xf32>
    %116 = arith.subf %114, %115 : vector<8x32xf32>
    %117 = arith.mulf %110, %76 : vector<8x32xf32>
    %118 = arith.mulf %109, %116 : vector<8x32xf32>
    %119 = arith.addf %117, %118 : vector<8x32xf32>
    %120 = math.tanh %119 : vector<8x32xf32>
    %121 = arith.mulf %111, %120 : vector<8x32xf32>
    %122 = tpu.concatenate %121, %99 in 1 : vector<8x32xf32>, vector<8x32xf32> -> vector<8x64xf32>
    %cst_38 = arith.constant dense<0.000000e+00> : vector<8x128xf32>
    %123 = tpu.matmul %122, %7, %cst_38 {dimension_numbers = #tpu.dot_dimension_numbers<[1], [0], [0], [1], [0, 0, 1, 1], [], []>} : vector<8x64xf32>, vector<64x128xf32>, vector<8x128xf32> -> vector<8x128xf32>
    %124 = arith.addf %123, %10 : vector<8x128xf32>
    %125 = arith.negf %124 : vector<8x128xf32>
    %126 = math.exp %125 : vector<8x128xf32>
    %cst_39 = arith.constant 1.000000e+00 : f32
    %127 = vector.broadcast %cst_39 : f32 to vector<8x128xf32>
    %128 = arith.addf %127, %126 : vector<8x128xf32>
    %129 = arith.divf %127, %128 : vector<8x128xf32>
    %130 = vector.extract_strided_slice %129 {offsets = [0, 0], sizes = [8, 32], strides = [1, 1]} : vector<8x128xf32> to vector<8x32xf32>
    %131 = vector.extract_strided_slice %129 {offsets = [0, 32], sizes = [8, 32], strides = [1, 1]} : vector<8x128xf32> to vector<8x32xf32>
    %132 = vector.extract_strided_slice %129 {offsets = [0, 64], sizes = [8, 32], strides = [1, 1]} : vector<8x128xf32> to vector<8x32xf32>
    %133 = vector.extract_strided_slice %129 {offsets = [0, 96], sizes = [8, 32], strides = [1, 1]} : vector<8x128xf32> to vector<8x32xf32>
    %cst_40 = arith.constant 2.000000e+00 : f32
    %134 = vector.broadcast %cst_40 : f32 to vector<8x32xf32>
    %135 = arith.mulf %134, %133 : vector<8x32xf32>
    %cst_41 = arith.constant 1.000000e+00 : f32
    %136 = vector.broadcast %cst_41 : f32 to vector<8x32xf32>
    %137 = arith.subf %135, %136 : vector<8x32xf32>
    %138 = arith.mulf %131, %97 : vector<8x32xf32>
    %139 = arith.mulf %130, %137 : vector<8x32xf32>
    %140 = arith.addf %138, %139 : vector<8x32xf32>
    %141 = math.tanh %140 : vector<8x32xf32>
    %142 = arith.mulf %132, %141 : vector<8x32xf32>
    %c16 = arith.constant 16 : index
    %c0_42 = arith.constant 0 : index
    %143 = vector.load %arg9[%c16, %c0_42] : memref<64x32xf32, #tpu.memory_space<vmem>>, vector<8x32xf32>
    tpu.vector_store %arg9[%c16, %c0_42], %142 {strides = array<i32>} : memref<64x32xf32, #tpu.memory_space<vmem>>, vector<8x32xf32>,
    %144 = vector.extract_strided_slice %5 {offsets = [24, 0], sizes = [8, 128], strides = [1, 1]} : vector<64x128xf32> to vector<8x128xf32>
    %cst_43 = arith.constant dense<0.000000e+00> : vector<8x128xf32>
    %145 = tpu.matmul %121, %6, %cst_43 {dimension_numbers = #tpu.dot_dimension_numbers<[1], [0], [0], [1], [0, 0, 1, 1], [], []>} : vector<8x32xf32>, vector<32x128xf32>, vector<8x128xf32> -> vector<8x128xf32>
    %146 = arith.addf %144, %145 : vector<8x128xf32>
    %147 = arith.negf %146 : vector<8x128xf32>
    %148 = math.exp %147 : vector<8x128xf32>
    %cst_44 = arith.constant 1.000000e+00 : f32
    %149 = vector.broadcast %cst_44 : f32 to vector<8x128xf32>
    %150 = arith.addf %149, %148 : vector<8x128xf32>
    %151 = arith.divf %149, %150 : vector<8x128xf32>
    %152 = vector.extract_strided_slice %151 {offsets = [0, 0], sizes = [8, 32], strides = [1, 1]} : vector<8x128xf32> to vector<8x32xf32>
    %153 = vector.extract_strided_slice %151 {offsets = [0, 32], sizes = [8, 32], strides = [1, 1]} : vector<8x128xf32> to vector<8x32xf32>
    %154 = vector.extract_strided_slice %151 {offsets = [0, 64], sizes = [8, 32], strides = [1, 1]} : vector<8x128xf32> to vector<8x32xf32>
    %155 = vector.extract_strided_slice %151 {offsets = [0, 96], sizes = [8, 32], strides = [1, 1]} : vector<8x128xf32> to vector<8x32xf32>
    %cst_45 = arith.constant 2.000000e+00 : f32
    %156 = vector.broadcast %cst_45 : f32 to vector<8x32xf32>
    %157 = arith.mulf %156, %155 : vector<8x32xf32>
    %cst_46 = arith.constant 1.000000e+00 : f32
    %158 = vector.broadcast %cst_46 : f32 to vector<8x32xf32>
    %159 = arith.subf %157, %158 : vector<8x32xf32>
    %160 = arith.mulf %153, %119 : vector<8x32xf32>
    %161 = arith.mulf %152, %159 : vector<8x32xf32>
    %162 = arith.addf %160, %161 : vector<8x32xf32>
    %163 = math.tanh %162 : vector<8x32xf32>
    %164 = arith.mulf %154, %163 : vector<8x32xf32>
    %165 = tpu.concatenate %164, %142 in 1 : vector<8x32xf32>, vector<8x32xf32> -> vector<8x64xf32>
    %cst_47 = arith.constant dense<0.000000e+00> : vector<8x128xf32>
    %166 = tpu.matmul %165, %7, %cst_47 {dimension_numbers = #tpu.dot_dimension_numbers<[1], [0], [0], [1], [0, 0, 1, 1], [], []>} : vector<8x64xf32>, vector<64x128xf32>, vector<8x128xf32> -> vector<8x128xf32>
    %167 = arith.addf %166, %10 : vector<8x128xf32>
    %168 = arith.negf %167 : vector<8x128xf32>
    %169 = math.exp %168 : vector<8x128xf32>
    %cst_48 = arith.constant 1.000000e+00 : f32
    %170 = vector.broadcast %cst_48 : f32 to vector<8x128xf32>
    %171 = arith.addf %170, %169 : vector<8x128xf32>
    %172 = arith.divf %170, %171 : vector<8x128xf32>
    %173 = vector.extract_strided_slice %172 {offsets = [0, 0], sizes = [8, 32], strides = [1, 1]} : vector<8x128xf32> to vector<8x32xf32>
    %174 = vector.extract_strided_slice %172 {offsets = [0, 32], sizes = [8, 32], strides = [1, 1]} : vector<8x128xf32> to vector<8x32xf32>
    %175 = vector.extract_strided_slice %172 {offsets = [0, 64], sizes = [8, 32], strides = [1, 1]} : vector<8x128xf32> to vector<8x32xf32>
    %176 = vector.extract_strided_slice %172 {offsets = [0, 96], sizes = [8, 32], strides = [1, 1]} : vector<8x128xf32> to vector<8x32xf32>
    %cst_49 = arith.constant 2.000000e+00 : f32
    %177 = vector.broadcast %cst_49 : f32 to vector<8x32xf32>
    %178 = arith.mulf %177, %176 : vector<8x32xf32>
    %cst_50 = arith.constant 1.000000e+00 : f32
    %179 = vector.broadcast %cst_50 : f32 to vector<8x32xf32>
    %180 = arith.subf %178, %179 : vector<8x32xf32>
    %181 = arith.mulf %174, %140 : vector<8x32xf32>
    %182 = arith.mulf %173, %180 : vector<8x32xf32>
    %183 = arith.addf %181, %182 : vector<8x32xf32>
    %184 = math.tanh %183 : vector<8x32xf32>
    %185 = arith.mulf %175, %184 : vector<8x32xf32>
    %c24 = arith.constant 24 : index
    %c0_51 = arith.constant 0 : index
    %186 = vector.load %arg9[%c24, %c0_51] : memref<64x32xf32, #tpu.memory_space<vmem>>, vector<8x32xf32>
    tpu.vector_store %arg9[%c24, %c0_51], %185 {strides = array<i32>} : memref<64x32xf32, #tpu.memory_space<vmem>>, vector<8x32xf32>,
    %187 = vector.extract_strided_slice %5 {offsets = [32, 0], sizes = [8, 128], strides = [1, 1]} : vector<64x128xf32> to vector<8x128xf32>
    %cst_52 = arith.constant dense<0.000000e+00> : vector<8x128xf32>
    %188 = tpu.matmul %164, %6, %cst_52 {dimension_numbers = #tpu.dot_dimension_numbers<[1], [0], [0], [1], [0, 0, 1, 1], [], []>} : vector<8x32xf32>, vector<32x128xf32>, vector<8x128xf32> -> vector<8x128xf32>
    %189 = arith.addf %187, %188 : vector<8x128xf32>
    %190 = arith.negf %189 : vector<8x128xf32>
    %191 = math.exp %190 : vector<8x128xf32>
    %cst_53 = arith.constant 1.000000e+00 : f32
    %192 = vector.broadcast %cst_53 : f32 to vector<8x128xf32>
    %193 = arith.addf %192, %191 : vector<8x128xf32>
    %194 = arith.divf %192, %193 : vector<8x128xf32>
    %195 = vector.extract_strided_slice %194 {offsets = [0, 0], sizes = [8, 32], strides = [1, 1]} : vector<8x128xf32> to vector<8x32xf32>
    %196 = vector.extract_strided_slice %194 {offsets = [0, 32], sizes = [8, 32], strides = [1, 1]} : vector<8x128xf32> to vector<8x32xf32>
    %197 = vector.extract_strided_slice %194 {offsets = [0, 64], sizes = [8, 32], strides = [1, 1]} : vector<8x128xf32> to vector<8x32xf32>
    %198 = vector.extract_strided_slice %194 {offsets = [0, 96], sizes = [8, 32], strides = [1, 1]} : vector<8x128xf32> to vector<8x32xf32>
    %cst_54 = arith.constant 2.000000e+00 : f32
    %199 = vector.broadcast %cst_54 : f32 to vector<8x32xf32>
    %200 = arith.mulf %199, %198 : vector<8x32xf32>
    %cst_55 = arith.constant 1.000000e+00 : f32
    %201 = vector.broadcast %cst_55 : f32 to vector<8x32xf32>
    %202 = arith.subf %200, %201 : vector<8x32xf32>
    %203 = arith.mulf %196, %162 : vector<8x32xf32>
    %204 = arith.mulf %195, %202 : vector<8x32xf32>
    %205 = arith.addf %203, %204 : vector<8x32xf32>
    %206 = math.tanh %205 : vector<8x32xf32>
    %207 = arith.mulf %197, %206 : vector<8x32xf32>
    %208 = tpu.concatenate %207, %185 in 1 : vector<8x32xf32>, vector<8x32xf32> -> vector<8x64xf32>
    %cst_56 = arith.constant dense<0.000000e+00> : vector<8x128xf32>
    %209 = tpu.matmul %208, %7, %cst_56 {dimension_numbers = #tpu.dot_dimension_numbers<[1], [0], [0], [1], [0, 0, 1, 1], [], []>} : vector<8x64xf32>, vector<64x128xf32>, vector<8x128xf32> -> vector<8x128xf32>
    %210 = arith.addf %209, %10 : vector<8x128xf32>
    %211 = arith.negf %210 : vector<8x128xf32>
    %212 = math.exp %211 : vector<8x128xf32>
    %cst_57 = arith.constant 1.000000e+00 : f32
    %213 = vector.broadcast %cst_57 : f32 to vector<8x128xf32>
    %214 = arith.addf %213, %212 : vector<8x128xf32>
    %215 = arith.divf %213, %214 : vector<8x128xf32>
    %216 = vector.extract_strided_slice %215 {offsets = [0, 0], sizes = [8, 32], strides = [1, 1]} : vector<8x128xf32> to vector<8x32xf32>
    %217 = vector.extract_strided_slice %215 {offsets = [0, 32], sizes = [8, 32], strides = [1, 1]} : vector<8x128xf32> to vector<8x32xf32>
    %218 = vector.extract_strided_slice %215 {offsets = [0, 64], sizes = [8, 32], strides = [1, 1]} : vector<8x128xf32> to vector<8x32xf32>
    %219 = vector.extract_strided_slice %215 {offsets = [0, 96], sizes = [8, 32], strides = [1, 1]} : vector<8x128xf32> to vector<8x32xf32>
    %cst_58 = arith.constant 2.000000e+00 : f32
    %220 = vector.broadcast %cst_58 : f32 to vector<8x32xf32>
    %221 = arith.mulf %220, %219 : vector<8x32xf32>
    %cst_59 = arith.constant 1.000000e+00 : f32
    %222 = vector.broadcast %cst_59 : f32 to vector<8x32xf32>
    %223 = arith.subf %221, %222 : vector<8x32xf32>
    %224 = arith.mulf %217, %183 : vector<8x32xf32>
    %225 = arith.mulf %216, %223 : vector<8x32xf32>
    %226 = arith.addf %224, %225 : vector<8x32xf32>
    %227 = math.tanh %226 : vector<8x32xf32>
    %228 = arith.mulf %218, %227 : vector<8x32xf32>
    %c32 = arith.constant 32 : index
    %c0_60 = arith.constant 0 : index
    %229 = vector.load %arg9[%c32, %c0_60] : memref<64x32xf32, #tpu.memory_space<vmem>>, vector<8x32xf32>
    tpu.vector_store %arg9[%c32, %c0_60], %228 {strides = array<i32>} : memref<64x32xf32, #tpu.memory_space<vmem>>, vector<8x32xf32>,
    %230 = vector.extract_strided_slice %5 {offsets = [40, 0], sizes = [8, 128], strides = [1, 1]} : vector<64x128xf32> to vector<8x128xf32>
    %cst_61 = arith.constant dense<0.000000e+00> : vector<8x128xf32>
    %231 = tpu.matmul %207, %6, %cst_61 {dimension_numbers = #tpu.dot_dimension_numbers<[1], [0], [0], [1], [0, 0, 1, 1], [], []>} : vector<8x32xf32>, vector<32x128xf32>, vector<8x128xf32> -> vector<8x128xf32>
    %232 = arith.addf %230, %231 : vector<8x128xf32>
    %233 = arith.negf %232 : vector<8x128xf32>
    %234 = math.exp %233 : vector<8x128xf32>
    %cst_62 = arith.constant 1.000000e+00 : f32
    %235 = vector.broadcast %cst_62 : f32 to vector<8x128xf32>
    %236 = arith.addf %235, %234 : vector<8x128xf32>
    %237 = arith.divf %235, %236 : vector<8x128xf32>
    %238 = vector.extract_strided_slice %237 {offsets = [0, 0], sizes = [8, 32], strides = [1, 1]} : vector<8x128xf32> to vector<8x32xf32>
    %239 = vector.extract_strided_slice %237 {offsets = [0, 32], sizes = [8, 32], strides = [1, 1]} : vector<8x128xf32> to vector<8x32xf32>
    %240 = vector.extract_strided_slice %237 {offsets = [0, 64], sizes = [8, 32], strides = [1, 1]} : vector<8x128xf32> to vector<8x32xf32>
    %241 = vector.extract_strided_slice %237 {offsets = [0, 96], sizes = [8, 32], strides = [1, 1]} : vector<8x128xf32> to vector<8x32xf32>
    %cst_63 = arith.constant 2.000000e+00 : f32
    %242 = vector.broadcast %cst_63 : f32 to vector<8x32xf32>
    %243 = arith.mulf %242, %241 : vector<8x32xf32>
    %cst_64 = arith.constant 1.000000e+00 : f32
    %244 = vector.broadcast %cst_64 : f32 to vector<8x32xf32>
    %245 = arith.subf %243, %244 : vector<8x32xf32>
    %246 = arith.mulf %239, %205 : vector<8x32xf32>
    %247 = arith.mulf %238, %245 : vector<8x32xf32>
    %248 = arith.addf %246, %247 : vector<8x32xf32>
    %249 = math.tanh %248 : vector<8x32xf32>
    %250 = arith.mulf %240, %249 : vector<8x32xf32>
    %251 = tpu.concatenate %250, %228 in 1 : vector<8x32xf32>, vector<8x32xf32> -> vector<8x64xf32>
    %cst_65 = arith.constant dense<0.000000e+00> : vector<8x128xf32>
    %252 = tpu.matmul %251, %7, %cst_65 {dimension_numbers = #tpu.dot_dimension_numbers<[1], [0], [0], [1], [0, 0, 1, 1], [], []>} : vector<8x64xf32>, vector<64x128xf32>, vector<8x128xf32> -> vector<8x128xf32>
    %253 = arith.addf %252, %10 : vector<8x128xf32>
    %254 = arith.negf %253 : vector<8x128xf32>
    %255 = math.exp %254 : vector<8x128xf32>
    %cst_66 = arith.constant 1.000000e+00 : f32
    %256 = vector.broadcast %cst_66 : f32 to vector<8x128xf32>
    %257 = arith.addf %256, %255 : vector<8x128xf32>
    %258 = arith.divf %256, %257 : vector<8x128xf32>
    %259 = vector.extract_strided_slice %258 {offsets = [0, 0], sizes = [8, 32], strides = [1, 1]} : vector<8x128xf32> to vector<8x32xf32>
    %260 = vector.extract_strided_slice %258 {offsets = [0, 32], sizes = [8, 32], strides = [1, 1]} : vector<8x128xf32> to vector<8x32xf32>
    %261 = vector.extract_strided_slice %258 {offsets = [0, 64], sizes = [8, 32], strides = [1, 1]} : vector<8x128xf32> to vector<8x32xf32>
    %262 = vector.extract_strided_slice %258 {offsets = [0, 96], sizes = [8, 32], strides = [1, 1]} : vector<8x128xf32> to vector<8x32xf32>
    %cst_67 = arith.constant 2.000000e+00 : f32
    %263 = vector.broadcast %cst_67 : f32 to vector<8x32xf32>
    %264 = arith.mulf %263, %262 : vector<8x32xf32>
    %cst_68 = arith.constant 1.000000e+00 : f32
    %265 = vector.broadcast %cst_68 : f32 to vector<8x32xf32>
    %266 = arith.subf %264, %265 : vector<8x32xf32>
    %267 = arith.mulf %260, %226 : vector<8x32xf32>
    %268 = arith.mulf %259, %266 : vector<8x32xf32>
    %269 = arith.addf %267, %268 : vector<8x32xf32>
    %270 = math.tanh %269 : vector<8x32xf32>
    %271 = arith.mulf %261, %270 : vector<8x32xf32>
    %c40 = arith.constant 40 : index
    %c0_69 = arith.constant 0 : index
    %272 = vector.load %arg9[%c40, %c0_69] : memref<64x32xf32, #tpu.memory_space<vmem>>, vector<8x32xf32>
    tpu.vector_store %arg9[%c40, %c0_69], %271 {strides = array<i32>} : memref<64x32xf32, #tpu.memory_space<vmem>>, vector<8x32xf32>,
    %273 = vector.extract_strided_slice %5 {offsets = [48, 0], sizes = [8, 128], strides = [1, 1]} : vector<64x128xf32> to vector<8x128xf32>
    %cst_70 = arith.constant dense<0.000000e+00> : vector<8x128xf32>
    %274 = tpu.matmul %250, %6, %cst_70 {dimension_numbers = #tpu.dot_dimension_numbers<[1], [0], [0], [1], [0, 0, 1, 1], [], []>} : vector<8x32xf32>, vector<32x128xf32>, vector<8x128xf32> -> vector<8x128xf32>
    %275 = arith.addf %273, %274 : vector<8x128xf32>
    %276 = arith.negf %275 : vector<8x128xf32>
    %277 = math.exp %276 : vector<8x128xf32>
    %cst_71 = arith.constant 1.000000e+00 : f32
    %278 = vector.broadcast %cst_71 : f32 to vector<8x128xf32>
    %279 = arith.addf %278, %277 : vector<8x128xf32>
    %280 = arith.divf %278, %279 : vector<8x128xf32>
    %281 = vector.extract_strided_slice %280 {offsets = [0, 0], sizes = [8, 32], strides = [1, 1]} : vector<8x128xf32> to vector<8x32xf32>
    %282 = vector.extract_strided_slice %280 {offsets = [0, 32], sizes = [8, 32], strides = [1, 1]} : vector<8x128xf32> to vector<8x32xf32>
    %283 = vector.extract_strided_slice %280 {offsets = [0, 64], sizes = [8, 32], strides = [1, 1]} : vector<8x128xf32> to vector<8x32xf32>
    %284 = vector.extract_strided_slice %280 {offsets = [0, 96], sizes = [8, 32], strides = [1, 1]} : vector<8x128xf32> to vector<8x32xf32>
    %cst_72 = arith.constant 2.000000e+00 : f32
    %285 = vector.broadcast %cst_72 : f32 to vector<8x32xf32>
    %286 = arith.mulf %285, %284 : vector<8x32xf32>
    %cst_73 = arith.constant 1.000000e+00 : f32
    %287 = vector.broadcast %cst_73 : f32 to vector<8x32xf32>
    %288 = arith.subf %286, %287 : vector<8x32xf32>
    %289 = arith.mulf %282, %248 : vector<8x32xf32>
    %290 = arith.mulf %281, %288 : vector<8x32xf32>
    %291 = arith.addf %289, %290 : vector<8x32xf32>
    %292 = math.tanh %291 : vector<8x32xf32>
    %293 = arith.mulf %283, %292 : vector<8x32xf32>
    %294 = tpu.concatenate %293, %271 in 1 : vector<8x32xf32>, vector<8x32xf32> -> vector<8x64xf32>
    %cst_74 = arith.constant dense<0.000000e+00> : vector<8x128xf32>
    %295 = tpu.matmul %294, %7, %cst_74 {dimension_numbers = #tpu.dot_dimension_numbers<[1], [0], [0], [1], [0, 0, 1, 1], [], []>} : vector<8x64xf32>, vector<64x128xf32>, vector<8x128xf32> -> vector<8x128xf32>
    %296 = arith.addf %295, %10 : vector<8x128xf32>
    %297 = arith.negf %296 : vector<8x128xf32>
    %298 = math.exp %297 : vector<8x128xf32>
    %cst_75 = arith.constant 1.000000e+00 : f32
    %299 = vector.broadcast %cst_75 : f32 to vector<8x128xf32>
    %300 = arith.addf %299, %298 : vector<8x128xf32>
    %301 = arith.divf %299, %300 : vector<8x128xf32>
    %302 = vector.extract_strided_slice %301 {offsets = [0, 0], sizes = [8, 32], strides = [1, 1]} : vector<8x128xf32> to vector<8x32xf32>
    %303 = vector.extract_strided_slice %301 {offsets = [0, 32], sizes = [8, 32], strides = [1, 1]} : vector<8x128xf32> to vector<8x32xf32>
    %304 = vector.extract_strided_slice %301 {offsets = [0, 64], sizes = [8, 32], strides = [1, 1]} : vector<8x128xf32> to vector<8x32xf32>
    %305 = vector.extract_strided_slice %301 {offsets = [0, 96], sizes = [8, 32], strides = [1, 1]} : vector<8x128xf32> to vector<8x32xf32>
    %cst_76 = arith.constant 2.000000e+00 : f32
    %306 = vector.broadcast %cst_76 : f32 to vector<8x32xf32>
    %307 = arith.mulf %306, %305 : vector<8x32xf32>
    %cst_77 = arith.constant 1.000000e+00 : f32
    %308 = vector.broadcast %cst_77 : f32 to vector<8x32xf32>
    %309 = arith.subf %307, %308 : vector<8x32xf32>
    %310 = arith.mulf %303, %269 : vector<8x32xf32>
    %311 = arith.mulf %302, %309 : vector<8x32xf32>
    %312 = arith.addf %310, %311 : vector<8x32xf32>
    %313 = math.tanh %312 : vector<8x32xf32>
    %314 = arith.mulf %304, %313 : vector<8x32xf32>
    %c48 = arith.constant 48 : index
    %c0_78 = arith.constant 0 : index
    %315 = vector.load %arg9[%c48, %c0_78] : memref<64x32xf32, #tpu.memory_space<vmem>>, vector<8x32xf32>
    tpu.vector_store %arg9[%c48, %c0_78], %314 {strides = array<i32>} : memref<64x32xf32, #tpu.memory_space<vmem>>, vector<8x32xf32>,
    %316 = vector.extract_strided_slice %5 {offsets = [56, 0], sizes = [8, 128], strides = [1, 1]} : vector<64x128xf32> to vector<8x128xf32>
    %cst_79 = arith.constant dense<0.000000e+00> : vector<8x128xf32>
    %317 = tpu.matmul %293, %6, %cst_79 {dimension_numbers = #tpu.dot_dimension_numbers<[1], [0], [0], [1], [0, 0, 1, 1], [], []>} : vector<8x32xf32>, vector<32x128xf32>, vector<8x128xf32> -> vector<8x128xf32>
    %318 = arith.addf %316, %317 : vector<8x128xf32>
    %319 = arith.negf %318 : vector<8x128xf32>
    %320 = math.exp %319 : vector<8x128xf32>
    %cst_80 = arith.constant 1.000000e+00 : f32
    %321 = vector.broadcast %cst_80 : f32 to vector<8x128xf32>
    %322 = arith.addf %321, %320 : vector<8x128xf32>
    %323 = arith.divf %321, %322 : vector<8x128xf32>
    %324 = vector.extract_strided_slice %323 {offsets = [0, 0], sizes = [8, 32], strides = [1, 1]} : vector<8x128xf32> to vector<8x32xf32>
    %325 = vector.extract_strided_slice %323 {offsets = [0, 32], sizes = [8, 32], strides = [1, 1]} : vector<8x128xf32> to vector<8x32xf32>
    %326 = vector.extract_strided_slice %323 {offsets = [0, 64], sizes = [8, 32], strides = [1, 1]} : vector<8x128xf32> to vector<8x32xf32>
    %327 = vector.extract_strided_slice %323 {offsets = [0, 96], sizes = [8, 32], strides = [1, 1]} : vector<8x128xf32> to vector<8x32xf32>
    %cst_81 = arith.constant 2.000000e+00 : f32
    %328 = vector.broadcast %cst_81 : f32 to vector<8x32xf32>
    %329 = arith.mulf %328, %327 : vector<8x32xf32>
    %cst_82 = arith.constant 1.000000e+00 : f32
    %330 = vector.broadcast %cst_82 : f32 to vector<8x32xf32>
    %331 = arith.subf %329, %330 : vector<8x32xf32>
    %332 = arith.mulf %325, %291 : vector<8x32xf32>
    %333 = arith.mulf %324, %331 : vector<8x32xf32>
    %334 = arith.addf %332, %333 : vector<8x32xf32>
    %335 = math.tanh %334 : vector<8x32xf32>
    %336 = arith.mulf %326, %335 : vector<8x32xf32>
    %337 = tpu.concatenate %336, %314 in 1 : vector<8x32xf32>, vector<8x32xf32> -> vector<8x64xf32>
    %cst_83 = arith.constant dense<0.000000e+00> : vector<8x128xf32>
    %338 = tpu.matmul %337, %7, %cst_83 {dimension_numbers = #tpu.dot_dimension_numbers<[1], [0], [0], [1], [0, 0, 1, 1], [], []>} : vector<8x64xf32>, vector<64x128xf32>, vector<8x128xf32> -> vector<8x128xf32>
    %339 = arith.addf %338, %10 : vector<8x128xf32>
    %340 = arith.negf %339 : vector<8x128xf32>
    %341 = math.exp %340 : vector<8x128xf32>
    %cst_84 = arith.constant 1.000000e+00 : f32
    %342 = vector.broadcast %cst_84 : f32 to vector<8x128xf32>
    %343 = arith.addf %342, %341 : vector<8x128xf32>
    %344 = arith.divf %342, %343 : vector<8x128xf32>
    %345 = vector.extract_strided_slice %344 {offsets = [0, 0], sizes = [8, 32], strides = [1, 1]} : vector<8x128xf32> to vector<8x32xf32>
    %346 = vector.extract_strided_slice %344 {offsets = [0, 32], sizes = [8, 32], strides = [1, 1]} : vector<8x128xf32> to vector<8x32xf32>
    %347 = vector.extract_strided_slice %344 {offsets = [0, 64], sizes = [8, 32], strides = [1, 1]} : vector<8x128xf32> to vector<8x32xf32>
    %348 = vector.extract_strided_slice %344 {offsets = [0, 96], sizes = [8, 32], strides = [1, 1]} : vector<8x128xf32> to vector<8x32xf32>
    %cst_85 = arith.constant 2.000000e+00 : f32
    %349 = vector.broadcast %cst_85 : f32 to vector<8x32xf32>
    %350 = arith.mulf %349, %348 : vector<8x32xf32>
    %cst_86 = arith.constant 1.000000e+00 : f32
    %351 = vector.broadcast %cst_86 : f32 to vector<8x32xf32>
    %352 = arith.subf %350, %351 : vector<8x32xf32>
    %353 = arith.mulf %346, %312 : vector<8x32xf32>
    %354 = arith.mulf %345, %352 : vector<8x32xf32>
    %355 = arith.addf %353, %354 : vector<8x32xf32>
    %356 = math.tanh %355 : vector<8x32xf32>
    %357 = arith.mulf %347, %356 : vector<8x32xf32>
    %c56 = arith.constant 56 : index
    %c0_87 = arith.constant 0 : index
    %358 = vector.load %arg9[%c56, %c0_87] : memref<64x32xf32, #tpu.memory_space<vmem>>, vector<8x32xf32>
    tpu.vector_store %arg9[%c56, %c0_87], %357 {strides = array<i32>} : memref<64x32xf32, #tpu.memory_space<vmem>>, vector<8x32xf32>,
    %c0_88 = arith.constant 0 : index
    %c0_89 = arith.constant 0 : index
    %359 = vector.load %arg9[%c0_88, %c0_89] : memref<64x32xf32, #tpu.memory_space<vmem>>, vector<64x32xf32>
    %cst_90 = arith.constant 0.000000e+00 : f32
    %360 = vector.broadcast %cst_90 : f32 to vector<64x32xf32>
    %361 = arith.maximumf %359, %360 : vector<64x32xf32>
    %c0_91 = arith.constant 0 : index
    %c0_92 = arith.constant 0 : index
    %362 = vector.load %arg6[%c0_91, %c0_92] : memref<32x128xf32, #tpu.memory_space<vmem>>, vector<32x128xf32>
    %cst_93 = arith.constant dense<0.000000e+00> : vector<64x128xf32>
    %363 = tpu.matmul %361, %362, %cst_93 {dimension_numbers = #tpu.dot_dimension_numbers<[1], [0], [0], [1], [0, 0, 1, 1], [], []>} : vector<64x32xf32>, vector<32x128xf32>, vector<64x128xf32> -> vector<64x128xf32>
    %c0_94 = arith.constant 0 : index
    %c0_95 = arith.constant 0 : index
    %364 = vector.load %arg7[%c0_94, %c0_95] : memref<1x128xf32, #tpu.memory_space<vmem>>, vector<1x128xf32>
    %365 = vector.broadcast %364 : vector<1x128xf32> to vector<64x128xf32>
    %366 = arith.addf %363, %365 : vector<64x128xf32>
    %cst_96 = arith.constant 0.000000e+00 : f32
    %367 = vector.broadcast %cst_96 : f32 to vector<64x128xf32>
    %368 = arith.maximumf %366, %367 : vector<64x128xf32>
    %c0_97 = arith.constant 0 : index
    %c0_98 = arith.constant 0 : index
    %369 = vector.load %arg8[%c0_97, %c0_98] : memref<64x128xf32, #tpu.memory_space<vmem>>, vector<64x128xf32>
    tpu.vector_store %arg8[%c0_97, %c0_98], %368 {strides = array<i32>} : memref<64x128xf32, #tpu.memory_space<vmem>>, vector<64x128xf32>,
    return
  }
}

</mosaic_0001>

<bundles_post_ra>
// kernel: tpu_custom_call.1
= control target key start
LH: loop header
LB: loop body
LE: loop exit
PB: predicated region body
PF: predicated region fallthrough
CT: control target
= control target key end

     0   :  { %13 = vsyncpa [#allocation4], 0  ;;  %s2112_s0 = inlined_call_operand.vmem [shape: f32[64,4], index: 0, kind: input, shape index: {}]   ;;  %s2113_s1 = inlined_call_operand.vmem [shape: f32[4,128], index: 1, kind: input, shape index: {}]   ;;  %s2114_s2 = inlined_call_operand.hbm [shape: f32[32,128], index: 2, kind: input, shape index: {}]   ;;  %s2115_s3 = inlined_call_operand.vmem [shape: f32[1,128], index: 3, kind: input, shape index: {}]   ;;  %s2116_s4 = inlined_call_operand.vmem [shape: f32[64,128], index: 4, kind: input, shape index: {}]   ;;  %s2117_s5 = inlined_call_operand.vmem [shape: f32[1,128], index: 5, kind: input, shape index: {}]   ;;  %s2118_s6 = inlined_call_operand.hbm [shape: f32[32,128], index: 6, kind: input, shape index: {}]   ;;  %s2119_s7 = inlined_call_operand.vmem [shape: f32[1,128], index: 7, kind: input, shape index: {}]   ;;  %s2120_s8 = inlined_call_operand.hbm [shape: f32[64,128], index: 8, kind: output, shape index: {}]  }
   0x1   :  { %14 = vsyncpa [#allocation7], 0 }
   0x2   :  { %15 = vsyncpa [#allocation5], 0  ;;  %s24_s29 = sshll.u32 %s2114_s2, 4  ;;  %s1626_s30 = smov [#allocation3]   ;;  %s25_s29 = int_to_ptr.hbm [resolvable:$true] %s24_s29 }
   0x3   :  { %s26_s9 = sshll.u32 %s1626_s30, 4  ;;  %s43_s12 = sshll.u32 %s2118_s6, 4  ;;  %s27_s9 = int_to_ptr.vmem [resolvable:$true] %s26_s9  ;;  %s44_s12 = int_to_ptr.hbm [resolvable:$true] %s43_s12 }
   0x4   :  { %s1627_s13 = smov 128   ;;  %s1628_s14 = smov 8  }
   0x5   :  { %32 = dma.hbm_to_vmem [thread:$0]  %s25_s29, 512, %s27_s9, [#allocation4], %s1627_s13, %s1627_s13, %s1628_s14  }
   0x6   :  { %s1629_s15 = smov [#allocation6]  }
   0x7   :  { %s45_s16 = sshll.u32 %s1629_s15, 4  ;;  %s46_s16 = int_to_ptr.vmem [resolvable:$true] %s45_s16 }
   0x8   :  { %51 = dma.hbm_to_vmem [thread:$0]  %s44_s12, 512, %s46_s16, [#allocation7], %s1627_s13, %s1627_s13, %s1628_s14  }
   0x9   :  { %1620 = dma.done.wait [#allocation4], 512  }
   0xa   :  { %1621 = vsyncadd [#allocation4], 4294966784 }
   0xb   :  { %1622 = dma.done.wait [#allocation7], 512  }
   0xc   :  { %1623 = vsyncadd [#allocation7], 4294966784  ;;  %vm100_vm0 = vcmask 1043456   ;;  %vm75_vm1 = vcmask 31744   ;;  %v1692_v0 = vld [vmem:[#allocation3 + $0x18] sm:$0xff]  ;;  %v1694_v1 = vld [vmem:[#allocation3 + $0x10] sm:$0xff] }
   0xd   :  { %v70_v2 = vld [vmem:[%s2113_s1] sm:$0xf]  ;;  %177 = vmatpush.msra.mxu1 %v1692_v0  ;;  %v1703_v4 = vld [vmem:[#allocation3 + $0x8] sm:$0xff]  ;;  %310 = vmatpush.msra.mxu3 %v1692_v0  ;;  %v1630_v6 = vmov 0.0   ;;  %s1631_s20 = smov 32   ;;  %v1734_v33 = vld [vmem:[%s2116_s4 + $0x38] sm:$0xff] }
   0xe   :  { %1366 = vmatpush.msk.msra.mxu0 %vm100_vm0, %v70_v2  ;;  %v62_v3 = vld [vmem:[%s2112_s0] sm:$0xff]  ;;  %v1739_v34 = vld [vmem:[%s2116_s4 + $0x30] sm:$0xff]  ;;  %241 = vmatpush.msra.mxu2 %v1734_v33  ;;  %v1746_v35 = vld [vmem:[%s2116_s4 + $0x28] sm:$0xff]  ;;  %s1632_s15 = smov 64   ;;  %vm161_vm6 = vcmask 261120   ;;  %vm229_vm7 = vcmask 523264  }
   0xf   :  { %1367 = vmatmul.msk.f32.vlgmr.msra.gmra.mxu0 %vm75_vm1, %v62_v3  ;;  %178 = vmatpush.msra.mxu1 %v1694_v1  ;;  %v1708_v5 = vld [vmem:[#allocation3] sm:$0xff]  ;;  %v1762_v37 = vld [vmem:[%s2116_s4 + $0x18] sm:$0xff]  ;;  %v1770_v38 = vld [vmem:[%s2116_s4 + $0x10] sm:$0xff]  ;;  %s1633_s1 = smov 96   ;;  %s1352_s2 = sshll.u32 %s2120_s8, 4  ;;  %s1353_s2 = int_to_ptr.hbm [resolvable:$true] %s1352_s2 }
  0x10   :  { %311 = vmatpush.msra.mxu3 %v1694_v1  ;;  %v1722_v7 = vld [vmem:[%s2115_s3] ss:$0 sm:$0xff]  ;;  %1186 = vmatpush.msrb.mxu0 %v1734_v33  ;;  %v1778_v39 = vld [vmem:[%s2116_s4 + $0x8] sm:$0xff] }
  0x11   :  { %179 = vmatpush.msra.mxu1 %v1703_v4  ;;  %242 = vmatpush.msra.mxu2 %v1739_v34  ;;  %v1754_v36 = vld [vmem:[%s2116_s4 + $0x20] sm:$0xff]  ;;  %v63_v43 = vld [vmem:[%s2112_s0 + $0x8] sm:$0xff] }
  0x12   :  { %312 = vmatpush.msra.mxu3 %v1703_v4  ;;  %1187 = vmatpush.msrb.mxu0 %v1739_v34  ;;  %v1791_v42 = vld [vmem:[%s2116_s4] sm:$0xff] }
  0x13   :  { %180 = vmatpush.msra.mxu1 %v1708_v5  ;;  %243 = vmatpush.msra.mxu2 %v1746_v35  ;;  %v1835_v48 = vld [vmem:[%s2117_s5] ss:$0 sm:$0xff] }
  0x14   :  { %181 = vmatmul.f32.vlgmr.msra.gmra.mxu1 %v1630_v6  ;;  %313 = vmatpush.msra.mxu3 %v1708_v5 }
  0x15   :  { %376 = vmatpush.msrb.mxu1 %v1734_v33  ;;  %1188 = vmatpush.msrb.mxu0 %v1746_v35 }
  0x16   :  { %445 = vmatpush.msrb.mxu3 %v1692_v0  ;;  %244 = vmatpush.msra.mxu2 %v1754_v36 }
  0x17   :  { %377 = vmatpush.msrb.mxu1 %v1739_v34  ;;  %1189 = vmatpush.msrb.mxu0 %v1754_v36 }
  0x18   :  { %446 = vmatpush.msrb.mxu3 %v1694_v1  ;;  %245 = vmatpush.msra.mxu2 %v1762_v37 }
  0x19   :  { %378 = vmatpush.msrb.mxu1 %v1746_v35  ;;  %1190 = vmatpush.msrb.mxu0 %v1762_v37 }
  0x1a   :  { %447 = vmatpush.msrb.mxu3 %v1703_v4  ;;  %246 = vmatpush.msra.mxu2 %v1770_v38 }
  0x1b   :  { %379 = vmatpush.msrb.mxu1 %v1754_v36  ;;  %1191 = vmatpush.msrb.mxu0 %v1770_v38 }
  0x1c   :  { %448 = vmatpush.msrb.mxu3 %v1708_v5  ;;  %247 = vmatpush.msra.mxu2 %v1778_v39 }
  0x1d   :  { %380 = vmatpush.msrb.mxu1 %v1762_v37  ;;  %1192 = vmatpush.msrb.mxu0 %v1778_v39 }
  0x1e   :  { %248 = vmatpush.msra.mxu2 %v1791_v42  ;;  %1368 = vmatmul.msk.f32.gmra.mxu0 %vm75_vm1, %v63_v43 }
  0x1f   :  { %381 = vmatpush.msrb.mxu1 %v1770_v38  ;;  %1193 = vmatpush.msrb.mxu0 %v1791_v42 }
  0x20   :  { %511 = vmatpush.msrb.mxu2 %v1734_v33 }
  0x21   :  { %382 = vmatpush.msrb.mxu1 %v1778_v39 }
  0x22   :  { %512 = vmatpush.msrb.mxu2 %v1739_v34 }
  0x23   :  { %383 = vmatpush.msrb.mxu1 %v1791_v42 }
  0x24   :  { %513 = vmatpush.msrb.mxu2 %v1746_v35 }
  0x25   :  { %646 = vmatpush.msra.mxu1 %v1734_v33 }
  0x26   :  { %514 = vmatpush.msrb.mxu2 %v1754_v36 }
  0x27   :  { %647 = vmatpush.msra.mxu1 %v1739_v34 }
  0x28   :  { %515 = vmatpush.msrb.mxu2 %v1762_v37 }
  0x29   :  { %648 = vmatpush.msra.mxu1 %v1746_v35 }
  0x2a   :  { %516 = vmatpush.msrb.mxu2 %v1770_v38 }
  0x2b   :  { %649 = vmatpush.msra.mxu1 %v1754_v36 }
  0x2c   :  { %517 = vmatpush.msrb.mxu2 %v1778_v39 }
  0x2d   :  { %650 = vmatpush.msra.mxu1 %v1762_v37 }
  0x2e   :  { %518 = vmatpush.msrb.mxu2 %v1791_v42 }
  0x2f   :  { %651 = vmatpush.msra.mxu1 %v1770_v38 }
  0x31   :  { %652 = vmatpush.msra.mxu1 %v1778_v39 }
  0x33   :  { %653 = vmatpush.msra.mxu1 %v1791_v42 }
  0x8c   :  { %v121_v8 = vpop.f32.mrf.mxu0 }
  0x8d   :  { %v122_v9 = vadd.f32 %v1722_v7, %v121_v8 }
  0x91   :  { %v182_v10 = vpop.f32.mrf.mxu1 }
  0x92   :  { %v185_v11 = vadd.f32 %v182_v10, %v122_v9 }
  0x94   :  { %v1375_v12 = vmul.f32 -1.442695, %v185_v11 }
  0x96   :  { %1450 = vpow2.f32 %v1375_v12 }
  0x9b   :  { %v124_v46 = vpop.f32.mrf.mxu0 }
  0x9c   :  { %v1451_v13 = vpop.eup %1450  ;;  %v125_v47 = vadd.f32 %v1722_v7, %v124_v46 }
  0x9d   :  { %v189_v14 = vadd.f32 1.0, %v1451_v13 }
  0x9f   :  { %1452 = vrcp.f32 %v189_v14  ;;  %v201_v18 = vand.u32 2147483648, %v189_v14  ;;  %v199_v20 = vand.u32 2147483647, %v189_v14  ;;  %vm195_vm3 = vweird.f32 %v189_v14 }
  0xa1   :  { %v202_v22 = vor.u32 1.1754944e-38, %v201_v18  ;;  %vm200_vm5 = vcmp.eq.f32.partialorder %v199_v20, 8.507059e+37 }
  0xa5   :  { %v1453_v15 = vpop.eup %1452 }
  0xa6   :  { %v191_v16 = vmul.f32 %v1453_v15, %v189_v14  ;;  %vm196_vm2 = vweird.f32 %v1453_v15 }
  0xa7   :  { %vm197_vm4 = vmor %vm195_vm3, %vm196_vm2 }
  0xa8   :  { %v192_v17 = vsub.f32 1.0, %v191_v16 }
  0xaa   :  { %v193_v19 = vmul.f32 %v1453_v15, %v192_v17 }
  0xac   :  { %v194_v21 = vadd.f32 %v1453_v15, %v193_v19 }
  0xae   :  { %v198_v23 = vsel %vm197_vm4, %v1453_v15, %v194_v21 }
  0xaf   :  { %v203_v24 = vsel %vm200_vm5, %v202_v22, %v198_v23 }
  0xb0   :  { %v205_v25 = vmul.f32 2.0, %v203_v24  ;;  %v207_v29 = vmul.f32 0.0, %v203_v24 }
  0xb2   :  { %v1376_v26 = vadd.f32 -1.0, %v205_v25 }
  0xb4   :  { %209 = vrot.lane.b32.xlu0 %v1376_v26, %s1631_s20 }
 0x126   :  { %v210_v27 = vpop.permute.xlu0 %209 }
 0x127   :  { %v212_v28 = vmul.f32 %v210_v27, %v203_v24 }
 0x129   :  { %214 = vrot.lane.b32.xlu0 %v212_v28, %s1631_s20 }
 0x19b   :  { %v215_v30 = vpop.permute.xlu0 %214 }
 0x19c   :  { %v1727_v31 = vadd.f32 %v215_v30, %v207_v29 }
 0x19e   :  { %1454 = vtanh.f32 %v1727_v31 }
 0x1a4   :  { %v1455_v32 = vpop.eup %1454 }
 0x1a5   :  { %220 = vrot.lane.b32.xlu1 %v1455_v32, %s1631_s20 }
 0x217   :  { %v221_v40 = vpop.permute.xlu1 %220 }
 0x218   :  { %v223_v41 = vmul.f32 %v221_v40, %v203_v24 }
 0x21a   :  { %225 = vrot.lane.b32.xlu1 %v223_v41, %s1632_s15 }
 0x28c   :  { %v226_v44 = vpop.permute.xlu1 %225 }
 0x28d   :  { %1380 = vmatmul.msk.f32.vlgmr.msra.gmra.mxu3 %vm161_vm6, %v226_v44  ;;  %v228_v45 = vsel %vm161_vm6, %v226_v44, 0.0 }
 0x28e   :  { %1377 = vmatmul.msk.f32.vlgmr.msra.gmra.mxu2 %vm229_vm7, %v228_v45  ;;  %580 = vmatpush.msra.mxu3 %v1692_v0 }
 0x28f   :  { %781 = vmatpush.msra.mxu2 %v1734_v33 }
 0x290   :  { %581 = vmatpush.msra.mxu3 %v1694_v1 }
 0x291   :  { %782 = vmatpush.msra.mxu2 %v1739_v34 }
 0x292   :  { %582 = vmatpush.msra.mxu3 %v1703_v4 }
 0x293   :  { %783 = vmatpush.msra.mxu2 %v1746_v35 }
 0x294   :  { %583 = vmatpush.msra.mxu3 %v1708_v5 }
 0x295   :  { %784 = vmatpush.msra.mxu2 %v1754_v36 }
 0x297   :  { %785 = vmatpush.msra.mxu2 %v1762_v37 }
 0x299   :  { %786 = vmatpush.msra.mxu2 %v1770_v38 }
 0x29b   :  { %787 = vmatpush.msra.mxu2 %v1778_v39 }
 0x29d   :  { %788 = vmatpush.msra.mxu2 %v1791_v42 }
 0x310   :  { %v315_v49 = vpop.f32.mrf.mxu3 }
 0x311   :  { %v318_v50 = vadd.f32 %v315_v49, %v125_v47  ;;  %v250_v51 = vpop.f32.mrf.mxu2  ;;  %v64_v49 = vld [vmem:[%s2112_s0 + $0x10] sm:$0xff] }
 0x312   :  { %v251_v52 = vadd.f32 %v1835_v48, %v250_v51  ;;  %1369 = vmatmul.msk.f32.gmra.mxu0 %vm75_vm1, %v64_v49 }
 0x313   :  { %v1381_v53 = vmul.f32 -1.442695, %v318_v50 }
 0x314   :  { %v1378_v54 = vmul.f32 -1.442695, %v251_v52 }
 0x315   :  { %1456 = vpow2.f32 %v1381_v53 }
 0x316   :  { %1458 = vpow2.f32 %v1378_v54 }
 0x31b   :  { %v1457_v55 = vpop.eup %1456 }
 0x31c   :  { %v1459_v56 = vpop.eup %1458  ;;  %v322_v57 = vadd.f32 1.0, %v1457_v55 }
 0x31d   :  { %v256_v58 = vadd.f32 1.0, %v1459_v56 }
 0x31e   :  { %1460 = vrcp.f32 %v322_v57  ;;  %v334_v3 = vand.u32 2147483648, %v322_v57  ;;  %v332_v8 = vand.u32 2147483647, %v322_v57  ;;  %vm328_vm9 = vweird.f32 %v322_v57 }
 0x31f   :  { %1462 = vrcp.f32 %v256_v58  ;;  %v268_v13 = vand.u32 2147483648, %v256_v58  ;;  %vm262_vm13 = vweird.f32 %v256_v58  ;;  %v266_v15 = vand.u32 2147483647, %v256_v58 }
 0x320   :  { %v335_v11 = vor.u32 1.1754944e-38, %v334_v3  ;;  %vm333_vm12 = vcmp.eq.f32.partialorder %v332_v8, 8.507059e+37 }
 0x321   :  { %v269_v19 = vor.u32 1.1754944e-38, %v268_v13  ;;  %vm267_vm15 = vcmp.eq.f32.partialorder %v266_v15, 8.507059e+37 }
 0x324   :  { %v1461_v59 = vpop.eup %1460 }
 0x325   :  { %v1463_v60 = vpop.eup %1462  ;;  %v324_v61 = vmul.f32 %v1461_v59, %v322_v57  ;;  %vm329_vm8 = vweird.f32 %v1461_v59 }
 0x326   :  { %v258_v62 = vmul.f32 %v1463_v60, %v256_v58  ;;  %vm263_vm10 = vweird.f32 %v1463_v60  ;;  %vm330_vm11 = vmor %vm328_vm9, %vm329_vm8 }
 0x327   :  { %v325_v63 = vsub.f32 1.0, %v324_v61  ;;  %vm264_vm14 = vmor %vm262_vm13, %vm263_vm10 }
 0x328   :  { %v259_v2 = vsub.f32 1.0, %v258_v62 }
 0x329   :  { %v326_v6 = vmul.f32 %v1461_v59, %v325_v63 }
 0x32a   :  { %v260_v9 = vmul.f32 %v1463_v60, %v259_v2 }
 0x32b   :  { %v327_v10 = vadd.f32 %v1461_v59, %v326_v6 }
 0x32c   :  { %v261_v12 = vadd.f32 %v1463_v60, %v260_v9 }
 0x32d   :  { %v331_v14 = vsel %vm330_vm11, %v1461_v59, %v327_v10 }
 0x32e   :  { %v336_v16 = vsel %vm333_vm12, %v335_v11, %v331_v14  ;;  %v265_v18 = vsel %vm264_vm14, %v1463_v60, %v261_v12 }
 0x32f   :  { %v338_v17 = vmul.f32 2.0, %v336_v16  ;;  %v270_v21 = vsel %vm267_vm15, %v269_v19, %v265_v18  ;;  %v340_v28 = vmul.f32 %v336_v16, %v1727_v31 }
 0x330   :  { %v272_v22 = vmul.f32 2.0, %v270_v21  ;;  %v274_v32 = vmul.f32 0.0, %v270_v21 }
 0x331   :  { %v1382_v20 = vadd.f32 -1.0, %v338_v17 }
 0x332   :  { %v1379_v23 = vadd.f32 -1.0, %v272_v22 }
 0x333   :  { %342 = vrot.lane.b32.xlu2 %v1382_v20, %s1631_s20 }
 0x33b   :  { %276 = vrot.lane.b32.xlu2 %v1379_v23, %s1631_s20 }
 0x38d   :  { %v343_v24 = vpop.permute.xlu2 %342 }
 0x38e   :  { %v345_v25 = vmul.f32 %v343_v24, %v336_v16 }
 0x38f   :  { %v127_v53 = vpop.f32.mrf.mxu0 }
 0x390   :  { %347 = vrot.lane.b32.xlu0 %v345_v25, %s1631_s20  ;;  %v128_v54 = vadd.f32 %v1722_v7, %v127_v53 }
 0x395   :  { %v277_v26 = vpop.permute.xlu2 %276 }
 0x396   :  { %v279_v27 = vmul.f32 %v277_v26, %v270_v21 }
 0x398   :  { %281 = vrot.lane.b32.xlu1 %v279_v27, %s1631_s20 }
 0x402   :  { %v348_v29 = vpop.permute.xlu0 %347 }
 0x403   :  { %v1843_v30 = vadd.f32 %v348_v29, %v340_v28 }
 0x405   :  { %1464 = vtanh.f32 %v1843_v30 }
 0x40a   :  { %v282_v40 = vpop.permute.xlu1 %281 }
 0x40b   :  { %v1465_v41 = vpop.eup %1464  ;;  %v1846_v43 = vadd.f32 %v282_v40, %v274_v32 }
 0x40c   :  { %353 = vrot.lane.b32.xlu2 %v1465_v41, %s1631_s20 }
 0x40d   :  { %1466 = vtanh.f32 %v1846_v43 }
 0x413   :  { %v1467_v44 = vpop.eup %1466 }
 0x414   :  { %287 = vrot.lane.b32.xlu0 %v1467_v44, %s1631_s20 }
 0x466   :  { %v354_v45 = vpop.permute.xlu2 %353 }
 0x467   :  { %v356_v46 = vmul.f32 %v354_v45, %v336_v16 }
 0x469   :  { %358 = vrot.lane.b32.xlu1 %v356_v46, %s1632_s15 }
 0x486   :  { %v288_v31 = vpop.permute.xlu0 %287 }
 0x487   :  { %v1852_v47 = vmul.f32 %v288_v31, %v270_v21 }
 0x489   :  { %361 = vrot.lane.b32.xlu2 %v1852_v47, %s1633_s1 }
 0x4db   :  { %v359_v50 = vpop.permute.xlu1 %358 }
 0x4dc   :  { %1386 = vmatmul.msk.f32.vlgmr.msrb.gmra.mxu3 %vm161_vm6, %v359_v50 }
 0x4dd   :  { %715 = vmatpush.msrb.mxu3 %v1692_v0 }
 0x4df   :  { %716 = vmatpush.msrb.mxu3 %v1694_v1 }
 0x4e1   :  { %717 = vmatpush.msrb.mxu3 %v1703_v4 }
 0x4e3   :  { %v362_v51 = vpop.permute.xlu2 %361  ;;  %718 = vmatpush.msrb.mxu3 %v1708_v5 }
 0x4e4   :  { %v364_v52 = vsel %vm161_vm6, %v359_v50, %v362_v51 }
 0x4e5   :  { %1383 = vmatmul.msk.f32.vlgmr.msrb.gmra.mxu1 %vm229_vm7, %v364_v52 }
 0x4e6   :  { %916 = vmatpush.msrb.mxu1 %v1734_v33 }
 0x4e8   :  { %917 = vmatpush.msrb.mxu1 %v1739_v34 }
 0x4ea   :  { %918 = vmatpush.msrb.mxu1 %v1746_v35 }
 0x4ec   :  { %919 = vmatpush.msrb.mxu1 %v1754_v36 }
 0x4ee   :  { %920 = vmatpush.msrb.mxu1 %v1762_v37 }
 0x4f0   :  { %921 = vmatpush.msrb.mxu1 %v1770_v38 }
 0x4f2   :  { %922 = vmatpush.msrb.mxu1 %v1778_v39 }
 0x4f4   :  { %923 = vmatpush.msrb.mxu1 %v1791_v42 }
 0x55f   :  { %v450_v55 = vpop.f32.mrf.mxu3 }
 0x560   :  { %v453_v56 = vadd.f32 %v450_v55, %v128_v54 }
 0x562   :  { %v1387_v57 = vmul.f32 -1.442695, %v453_v56  ;;  %v385_v58 = vpop.f32.mrf.mxu1 }
 0x563   :  { %v386_v59 = vadd.f32 %v1835_v48, %v385_v58 }
 0x564   :  { %1468 = vpow2.f32 %v1387_v57 }
 0x565   :  { %v1384_v60 = vmul.f32 -1.442695, %v386_v59 }
 0x567   :  { %1470 = vpow2.f32 %v1384_v60 }
 0x56a   :  { %v1469_v61 = vpop.eup %1468 }
 0x56b   :  { %v457_v62 = vadd.f32 1.0, %v1469_v61 }
 0x56d   :  { %v1471_v63 = vpop.eup %1470  ;;  %1472 = vrcp.f32 %v457_v62  ;;  %v469_v11 = vand.u32 2147483648, %v457_v62  ;;  %v467_v13 = vand.u32 2147483647, %v457_v62  ;;  %vm463_vm2 = vweird.f32 %v457_v62 }
 0x56e   :  { %v391_v2 = vadd.f32 1.0, %v1471_v63 }
 0x56f   :  { %v470_v17 = vor.u32 1.1754944e-38, %v469_v11  ;;  %vm468_vm5 = vcmp.eq.f32.partialorder %v467_v13, 8.507059e+37 }
 0x570   :  { %1474 = vrcp.f32 %v391_v2  ;;  %v403_v16 = vand.u32 2147483648, %v391_v2  ;;  %v401_v19 = vand.u32 2147483647, %v391_v2  ;;  %vm397_vm8 = vweird.f32 %v391_v2 }
 0x572   :  { %v404_v24 = vor.u32 1.1754944e-38, %v403_v16  ;;  %vm402_vm10 = vcmp.eq.f32.partialorder %v401_v19, 8.507059e+37 }
 0x573   :  { %v1473_v3 = vpop.eup %1472 }
 0x574   :  { %v459_v6 = vmul.f32 %v1473_v3, %v457_v62  ;;  %vm464_vm0 = vweird.f32 %v1473_v3 }
 0x575   :  { %vm465_vm3 = vmor %vm463_vm2, %vm464_vm0 }
 0x576   :  { %v1475_v8 = vpop.eup %1474  ;;  %v460_v9 = vsub.f32 1.0, %v459_v6 }
 0x577   :  { %v393_v10 = vmul.f32 %v1475_v8, %v391_v2  ;;  %vm398_vm4 = vweird.f32 %v1475_v8 }
 0x578   :  { %v461_v12 = vmul.f32 %v1473_v3, %v460_v9  ;;  %vm399_vm9 = vmor %vm397_vm8, %vm398_vm4 }
 0x579   :  { %v394_v14 = vsub.f32 1.0, %v393_v10 }
 0x57a   :  { %v462_v15 = vadd.f32 %v1473_v3, %v461_v12 }
 0x57b   :  { %v395_v18 = vmul.f32 %v1475_v8, %v394_v14 }
 0x57c   :  { %v466_v20 = vsel %vm465_vm3, %v1473_v3, %v462_v15 }
 0x57d   :  { %v471_v21 = vsel %vm468_vm5, %v470_v17, %v466_v20  ;;  %v396_v22 = vadd.f32 %v1475_v8, %v395_v18 }
 0x57e   :  { %v473_v23 = vmul.f32 2.0, %v471_v21  ;;  %v475_v45 = vmul.f32 %v471_v21, %v1843_v30 }
 0x57f   :  { %v400_v25 = vsel %vm399_vm9, %v1475_v8, %v396_v22 }
 0x580   :  { %v1388_v26 = vadd.f32 -1.0, %v473_v23  ;;  %v405_v27 = vsel %vm402_vm10, %v404_v24, %v400_v25 }
 0x581   :  { %v407_v28 = vmul.f32 2.0, %v405_v27  ;;  %v409_v50 = vmul.f32 %v405_v27, %v1846_v43  ;;  %v65_v43 = vld [vmem:[%s2112_s0 + $0x18] sm:$0xff] }
 0x582   :  { %477 = vrot.lane.b32.xlu0 %v1388_v26, %s1631_s20  ;;  %1370 = vmatmul.msk.f32.gmra.mxu0 %vm75_vm1, %v65_v43 }
 0x583   :  { %v1385_v29 = vadd.f32 -1.0, %v407_v28 }
 0x585   :  { %411 = vrot.lane.b32.xlu1 %v1385_v29, %s1631_s20 }
 0x5f4   :  { %v478_v32 = vpop.permute.xlu0 %477 }
 0x5f5   :  { %v480_v40 = vmul.f32 %v478_v32, %v471_v21 }
 0x5f7   :  { %482 = vrot.lane.b32.xlu2 %v480_v40, %s1631_s20  ;;  %v412_v41 = vpop.permute.xlu1 %411 }
 0x5f8   :  { %v414_v44 = vmul.f32 %v412_v41, %v405_v27 }
 0x5fa   :  { %416 = vrot.lane.b32.xlu0 %v414_v44, %s1631_s20 }
 0x5ff   :  { %v130_v60 = vpop.f32.mrf.mxu0 }
 0x600   :  { %v131_v61 = vadd.f32 %v1722_v7, %v130_v60 }
 0x651   :  { %v483_v46 = vpop.permute.xlu2 %482 }
 0x652   :  { %v1882_v31 = vadd.f32 %v483_v46, %v475_v45 }
 0x654   :  { %1476 = vtanh.f32 %v1882_v31 }
 0x65a   :  { %v1477_v49 = vpop.eup %1476 }
 0x65b   :  { %488 = vrot.lane.b32.xlu1 %v1477_v49, %s1631_s20 }
 0x66c   :  { %v417_v51 = vpop.permute.xlu0 %416 }
 0x66d   :  { %v1887_v52 = vadd.f32 %v417_v51, %v409_v50 }
 0x66f   :  { %1478 = vtanh.f32 %v1887_v52 }
 0x675   :  { %v1479_v53 = vpop.eup %1478 }
 0x676   :  { %422 = vrot.lane.b32.xlu2 %v1479_v53, %s1631_s20 }
 0x6cd   :  { %v489_v54 = vpop.permute.xlu1 %488 }
 0x6ce   :  { %v491_v30 = vmul.f32 %v489_v54, %v471_v21 }
 0x6d0   :  { %493 = vrot.lane.b32.xlu0 %v491_v30, %s1632_s15  ;;  %v423_v55 = vpop.permute.xlu2 %422 }
 0x6d1   :  { %v1892_v56 = vmul.f32 %v423_v55, %v405_v27 }
 0x6d3   :  { %496 = vrot.lane.b32.xlu1 %v1892_v56, %s1633_s1 }
 0x742   :  { %v494_v57 = vpop.permute.xlu0 %493 }
 0x743   :  { %1392 = vmatmul.msk.f32.vlgmr.msra.gmra.mxu3 %vm161_vm6, %v494_v57 }
 0x744   :  { %850 = vmatpush.msra.mxu3 %v1692_v0 }
 0x745   :  { %v497_v58 = vpop.permute.xlu1 %496 }
 0x746   :  { %v499_v59 = vsel %vm161_vm6, %v494_v57, %v497_v58  ;;  %851 = vmatpush.msra.mxu3 %v1694_v1 }
 0x747   :  { %1389 = vmatmul.msk.f32.vlgmr.msrb.gmra.mxu2 %vm229_vm7, %v499_v59 }
 0x748   :  { %852 = vmatpush.msra.mxu3 %v1703_v4  ;;  %1051 = vmatpush.msrb.mxu2 %v1734_v33 }
 0x74a   :  { %853 = vmatpush.msra.mxu3 %v1708_v5  ;;  %1052 = vmatpush.msrb.mxu2 %v1739_v34 }
 0x74c   :  { %1053 = vmatpush.msrb.mxu2 %v1746_v35 }
 0x74e   :  { %1054 = vmatpush.msrb.mxu2 %v1754_v36 }
 0x750   :  { %1055 = vmatpush.msrb.mxu2 %v1762_v37 }
 0x752   :  { %1056 = vmatpush.msrb.mxu2 %v1770_v38 }
 0x754   :  { %1057 = vmatpush.msrb.mxu2 %v1778_v39 }
 0x756   :  { %1058 = vmatpush.msrb.mxu2 %v1791_v42 }
 0x7c6   :  { %v585_v33 = vpop.f32.mrf.mxu3 }
 0x7c7   :  { %v588_v62 = vadd.f32 %v585_v33, %v131_v61 }
 0x7c9   :  { %v1393_v63 = vmul.f32 -1.442695, %v588_v62 }
 0x7ca   :  { %v520_v2 = vpop.f32.mrf.mxu2 }
 0x7cb   :  { %1480 = vpow2.f32 %v1393_v63  ;;  %v521_v34 = vadd.f32 %v1835_v48, %v520_v2 }
 0x7cd   :  { %v1390_v35 = vmul.f32 -1.442695, %v521_v34 }
 0x7cf   :  { %1482 = vpow2.f32 %v1390_v35 }
 0x7d1   :  { %v1481_v36 = vpop.eup %1480 }
 0x7d2   :  { %v592_v37 = vadd.f32 1.0, %v1481_v36 }
 0x7d4   :  { %1484 = vrcp.f32 %v592_v37  ;;  %v602_v9 = vand.u32 2147483647, %v592_v37  ;;  %v604_v10 = vand.u32 2147483648, %v592_v37  ;;  %vm598_vm12 = vweird.f32 %v592_v37 }
 0x7d5   :  { %v1483_v38 = vpop.eup %1482 }
 0x7d6   :  { %v526_v3 = vadd.f32 1.0, %v1483_v38  ;;  %vm603_vm14 = vcmp.eq.f32.partialorder %v602_v9, 8.507059e+37  ;;  %v605_v15 = vor.u32 1.1754944e-38, %v604_v10 }
 0x7d8   :  { %1486 = vrcp.f32 %v526_v3  ;;  %v538_v16 = vand.u32 2147483648, %v526_v3  ;;  %v536_v19 = vand.u32 2147483647, %v526_v3  ;;  %vm532_vm0 = vweird.f32 %v526_v3 }
 0x7da   :  { %v1485_v39 = vpop.eup %1484  ;;  %v539_v23 = vor.u32 1.1754944e-38, %v538_v16  ;;  %vm537_vm3 = vcmp.eq.f32.partialorder %v536_v19, 8.507059e+37 }
 0x7db   :  { %v594_v42 = vmul.f32 %v1485_v39, %v592_v37  ;;  %vm599_vm11 = vweird.f32 %v1485_v39 }
 0x7dc   :  { %vm600_vm13 = vmor %vm598_vm12, %vm599_vm11 }
 0x7dd   :  { %v595_v6 = vsub.f32 1.0, %v594_v42 }
 0x7de   :  { %v1487_v8 = vpop.eup %1486 }
 0x7df   :  { %v528_v11 = vmul.f32 %v1487_v8, %v526_v3  ;;  %v596_v12 = vmul.f32 %v1485_v39, %v595_v6  ;;  %vm533_vm15 = vweird.f32 %v1487_v8 }
 0x7e0   :  { %vm534_vm2 = vmor %vm532_vm0, %vm533_vm15 }
 0x7e1   :  { %v529_v13 = vsub.f32 1.0, %v528_v11  ;;  %v597_v14 = vadd.f32 %v1485_v39, %v596_v12 }
 0x7e3   :  { %v601_v17 = vsel %vm600_vm13, %v1485_v39, %v597_v14  ;;  %v530_v18 = vmul.f32 %v1487_v8, %v529_v13 }
 0x7e4   :  { %v606_v20 = vsel %vm603_vm14, %v605_v15, %v601_v17 }
 0x7e5   :  { %v608_v21 = vmul.f32 2.0, %v606_v20  ;;  %v531_v22 = vadd.f32 %v1487_v8, %v530_v18  ;;  %v610_v44 = vmul.f32 %v606_v20, %v1882_v31 }
 0x7e7   :  { %v1394_v24 = vadd.f32 -1.0, %v608_v21  ;;  %v535_v25 = vsel %vm534_vm2, %v1487_v8, %v531_v22 }
 0x7e8   :  { %v540_v26 = vsel %vm537_vm3, %v539_v23, %v535_v25 }
 0x7e9   :  { %612 = vrot.lane.b32.xlu2 %v1394_v24, %s1631_s20  ;;  %v542_v27 = vmul.f32 2.0, %v540_v26  ;;  %v544_v49 = vmul.f32 %v540_v26, %v1887_v52  ;;  %v66_v52 = vld [vmem:[%s2112_s0 + $0x20] sm:$0xff] }
 0x7ea   :  { %1371 = vmatmul.msk.f32.gmra.mxu0 %vm75_vm1, %v66_v52 }
 0x7eb   :  { %v1391_v28 = vadd.f32 -1.0, %v542_v27 }
 0x7ed   :  { %546 = vrot.lane.b32.xlu0 %v1391_v28, %s1631_s20 }
 0x843   :  { %v613_v29 = vpop.permute.xlu2 %612 }
 0x844   :  { %v615_v32 = vmul.f32 %v613_v29, %v606_v20 }
 0x846   :  { %617 = vrot.lane.b32.xlu1 %v615_v32, %s1631_s20 }
 0x85f   :  { %v547_v40 = vpop.permute.xlu0 %546 }
 0x860   :  { %v549_v41 = vmul.f32 %v547_v40, %v540_v26 }
 0x862   :  { %551 = vrot.lane.b32.xlu2 %v549_v41, %s1631_s20 }
 0x867   :  { %v133_v60 = vpop.f32.mrf.mxu0 }
 0x868   :  { %v134_v61 = vadd.f32 %v1722_v7, %v133_v60 }
 0x8b8   :  { %v618_v45 = vpop.permute.xlu1 %617 }
 0x8b9   :  { %v1922_v46 = vadd.f32 %v618_v45, %v610_v44 }
 0x8bb   :  { %1488 = vtanh.f32 %v1922_v46 }
 0x8bc   :  { %v552_v50 = vpop.permute.xlu2 %551 }
 0x8bd   :  { %v1926_v51 = vadd.f32 %v552_v50, %v544_v49 }
 0x8bf   :  { %1490 = vtanh.f32 %v1926_v51 }
 0x8c1   :  { %v1489_v53 = vpop.eup %1488 }
 0x8c2   :  { %623 = vrot.lane.b32.xlu0 %v1489_v53, %s1631_s20 }
 0x8c5   :  { %v1491_v54 = vpop.eup %1490 }
 0x8c6   :  { %557 = vrot.lane.b32.xlu1 %v1491_v54, %s1631_s20 }
 0x934   :  { %v624_v30 = vpop.permute.xlu0 %623 }
 0x935   :  { %v626_v31 = vmul.f32 %v624_v30, %v606_v20 }
 0x937   :  { %628 = vrot.lane.b32.xlu2 %v626_v31, %s1632_s15 }
 0x938   :  { %v558_v55 = vpop.permute.xlu1 %557 }
 0x939   :  { %v1932_v43 = vmul.f32 %v558_v55, %v540_v26 }
 0x93b   :  { %631 = vrot.lane.b32.xlu0 %v1932_v43, %s1633_s1 }
 0x991   :  { %v629_v57 = vpop.permute.xlu2 %628 }
 0x992   :  { %1398 = vmatmul.msk.f32.vlgmr.msrb.gmra.mxu3 %vm161_vm6, %v629_v57 }
 0x993   :  { %985 = vmatpush.msrb.mxu3 %v1692_v0 }
 0x995   :  { %986 = vmatpush.msrb.mxu3 %v1694_v1 }
 0x997   :  { %987 = vmatpush.msrb.mxu3 %v1703_v4 }
 0x999   :  { %988 = vmatpush.msrb.mxu3 %v1708_v5 }
 0x9ad   :  { %v632_v58 = vpop.permute.xlu0 %631 }
 0x9ae   :  { %v634_v59 = vsel %vm161_vm6, %v629_v57, %v632_v58  ;;  %v67_v57 = vld [vmem:[%s2112_s0 + $0x28] sm:$0xff] }
 0x9af   :  { %1395 = vmatmul.msk.f32.vlgmr.msra.gmra.mxu1 %vm229_vm7, %v634_v59  ;;  %1372 = vmatmul.msk.f32.gmra.mxu0 %vm75_vm1, %v67_v57 }
 0xa15   :  { %v720_v33 = vpop.f32.mrf.mxu3 }
 0xa16   :  { %v723_v62 = vadd.f32 %v720_v33, %v134_v61 }
 0xa18   :  { %v1399_v63 = vmul.f32 -1.442695, %v723_v62 }
 0xa1a   :  { %1492 = vpow2.f32 %v1399_v63 }
 0xa20   :  { %v1493_v2 = vpop.eup %1492 }
 0xa21   :  { %v727_v34 = vadd.f32 1.0, %v1493_v2 }
 0xa23   :  { %1494 = vrcp.f32 %v727_v34  ;;  %v739_v39 = vand.u32 2147483648, %v727_v34  ;;  %v737_v6 = vand.u32 2147483647, %v727_v34  ;;  %vm733_vm5 = vweird.f32 %v727_v34 }
 0xa25   :  { %v740_v10 = vor.u32 1.1754944e-38, %v739_v39  ;;  %vm738_vm9 = vcmp.eq.f32.partialorder %v737_v6, 8.507059e+37 }
 0xa29   :  { %v1495_v35 = vpop.eup %1494 }
 0xa2a   :  { %v729_v36 = vmul.f32 %v1495_v35, %v727_v34  ;;  %vm734_vm4 = vweird.f32 %v1495_v35 }
 0xa2b   :  { %vm735_vm8 = vmor %vm733_vm5, %vm734_vm4 }
 0xa2c   :  { %v730_v37 = vsub.f32 1.0, %v729_v36  ;;  %v655_v38 = vpop.f32.mrf.mxu1  ;;  %v136_v61 = vpop.f32.mrf.mxu0 }
 0xa2d   :  { %v656_v3 = vadd.f32 %v1835_v48, %v655_v38  ;;  %v137_v33 = vadd.f32 %v1722_v7, %v136_v61  ;;  %v2011_v61 = vld [vmem:[%s2115_s3] ss:$0 sm:$0xff] }
 0xa2e   :  { %v731_v42 = vmul.f32 %v1495_v35, %v730_v37 }
 0xa2f   :  { %v1396_v8 = vmul.f32 -1.442695, %v656_v3 }
 0xa30   :  { %v732_v9 = vadd.f32 %v1495_v35, %v731_v42 }
 0xa31   :  { %1496 = vpow2.f32 %v1396_v8 }
 0xa32   :  { %v736_v11 = vsel %vm735_vm8, %v1495_v35, %v732_v9 }
 0xa33   :  { %v741_v12 = vsel %vm738_vm9, %v740_v10, %v736_v11 }
 0xa34   :  { %v743_v13 = vmul.f32 2.0, %v741_v12  ;;  %v745_v49 = vmul.f32 %v741_v12, %v1922_v46 }
 0xa36   :  { %v1400_v14 = vadd.f32 -1.0, %v743_v13 }
 0xa37   :  { %v1497_v15 = vpop.eup %1496 }
 0xa38   :  { %v661_v16 = vadd.f32 1.0, %v1497_v15  ;;  %747 = vrot.lane.b32.xlu1 %v1400_v14, %s1631_s20 }
 0xa3a   :  { %1498 = vrcp.f32 %v661_v16  ;;  %v673_v20 = vand.u32 2147483648, %v661_v16  ;;  %v671_v22 = vand.u32 2147483647, %v661_v16  ;;  %vm667_vm11 = vweird.f32 %v661_v16 }
 0xa3c   :  { %v674_v24 = vor.u32 1.1754944e-38, %v673_v20  ;;  %vm672_vm13 = vcmp.eq.f32.partialorder %v671_v22, 8.507059e+37 }
 0xa40   :  { %v1499_v17 = vpop.eup %1498 }
 0xa41   :  { %v663_v18 = vmul.f32 %v1499_v17, %v661_v16  ;;  %vm668_vm10 = vweird.f32 %v1499_v17 }
 0xa42   :  { %vm669_vm12 = vmor %vm667_vm11, %vm668_vm10 }
 0xa43   :  { %v664_v19 = vsub.f32 1.0, %v663_v18 }
 0xa45   :  { %v665_v21 = vmul.f32 %v1499_v17, %v664_v19 }
 0xa47   :  { %v666_v23 = vadd.f32 %v1499_v17, %v665_v21 }
 0xa49   :  { %v670_v25 = vsel %vm669_vm12, %v1499_v17, %v666_v23 }
 0xa4a   :  { %v675_v26 = vsel %vm672_vm13, %v674_v24, %v670_v25 }
 0xa4b   :  { %v677_v27 = vmul.f32 2.0, %v675_v26  ;;  %v679_v44 = vmul.f32 %v675_v26, %v1926_v51 }
 0xa4d   :  { %v1397_v28 = vadd.f32 -1.0, %v677_v27 }
 0xa4f   :  { %681 = vrot.lane.b32.xlu2 %v1397_v28, %s1631_s20 }
 0xaa9   :  { %v682_v29 = vpop.permute.xlu2 %681 }
 0xaaa   :  { %v684_v32 = vmul.f32 %v682_v29, %v675_v26  ;;  %v748_v40 = vpop.permute.xlu1 %747 }
 0xaab   :  { %v750_v41 = vmul.f32 %v748_v40, %v741_v12 }
 0xaac   :  { %686 = vrot.lane.b32.xlu1 %v684_v32, %s1631_s20 }
 0xaad   :  { %752 = vrot.lane.b32.xlu0 %v750_v41, %s1631_s20 }
 0xb1e   :  { %v687_v45 = vpop.permute.xlu1 %686 }
 0xb1f   :  { %v1955_v50 = vadd.f32 %v687_v45, %v679_v44  ;;  %v753_v53 = vpop.permute.xlu0 %752 }
 0xb20   :  { %v1957_v54 = vadd.f32 %v753_v53, %v745_v49 }
 0xb21   :  { %1500 = vtanh.f32 %v1955_v50 }
 0xb22   :  { %1502 = vtanh.f32 %v1957_v54 }
 0xb27   :  { %v1501_v30 = vpop.eup %1500 }
 0xb28   :  { %v1503_v31 = vpop.eup %1502  ;;  %692 = vrot.lane.b32.xlu0 %v1501_v30, %s1631_s20 }
 0xb29   :  { %758 = vrot.lane.b32.xlu2 %v1503_v31, %s1631_s20 }
 0xb83   :  { %v759_v55 = vpop.permute.xlu2 %758 }
 0xb84   :  { %v761_v51 = vmul.f32 %v759_v55, %v741_v12 }
 0xb86   :  { %763 = vrot.lane.b32.xlu1 %v761_v51, %s1632_s15 }
 0xb9a   :  { %v693_v46 = vpop.permute.xlu0 %692 }
 0xb9b   :  { %v1964_v52 = vmul.f32 %v693_v46, %v675_v26 }
 0xb9d   :  { %766 = vrot.lane.b32.xlu2 %v1964_v52, %s1633_s1 }
 0xbf7   :  { %v767_v58 = vpop.permute.xlu2 %766 }
 0xbf8   :  { %v764_v59 = vpop.permute.xlu1 %763 }
 0xbf9   :  { %v769_v60 = vsel %vm161_vm6, %v764_v59, %v767_v58  ;;  %1404 = vmatmul.msk.f32.vlgmr.msra.gmra.mxu3 %vm161_vm6, %v764_v59 }
 0xbfa   :  { %1401 = vmatmul.msk.f32.vlgmr.msra.gmra.mxu2 %vm229_vm7, %v769_v60  ;;  %1120 = vmatpush.msra.mxu3 %v1692_v0 }
 0xbfc   :  { %1121 = vmatpush.msra.mxu3 %v1694_v1 }
 0xbfe   :  { %1122 = vmatpush.msra.mxu3 %v1703_v4 }
 0xc00   :  { %1123 = vmatpush.msra.mxu3 %v1708_v5 }
 0xc7c   :  { %v855_v62 = vpop.f32.mrf.mxu3 }
 0xc7d   :  { %v858_v63 = vadd.f32 %v855_v62, %v137_v33  ;;  %v790_v2 = vpop.f32.mrf.mxu2 }
 0xc7e   :  { %v791_v34 = vadd.f32 %v1835_v48, %v790_v2 }
 0xc7f   :  { %v1405_v35 = vmul.f32 -1.442695, %v858_v63 }
 0xc80   :  { %v1402_v36 = vmul.f32 -1.442695, %v791_v34 }
 0xc81   :  { %1504 = vpow2.f32 %v1405_v35 }
 0xc82   :  { %1506 = vpow2.f32 %v1402_v36 }
 0xc87   :  { %v1505_v37 = vpop.eup %1504 }
 0xc88   :  { %v1507_v0 = vpop.eup %1506  ;;  %v862_v38 = vadd.f32 1.0, %v1505_v37 }
 0xc89   :  { %v796_v1 = vadd.f32 1.0, %v1507_v0 }
 0xc8a   :  { %1508 = vrcp.f32 %v862_v38  ;;  %v874_v6 = vand.u32 2147483648, %v862_v38  ;;  %v872_v9 = vand.u32 2147483647, %v862_v38  ;;  %vm868_vm0 = vweird.f32 %v862_v38 }
 0xc8b   :  { %1510 = vrcp.f32 %v796_v1  ;;  %v808_v10 = vand.u32 2147483648, %v796_v1  ;;  %v806_v12 = vand.u32 2147483647, %v796_v1  ;;  %vm802_vm3 = vweird.f32 %v796_v1 }
 0xc8c   :  { %v875_v14 = vor.u32 1.1754944e-38, %v874_v6  ;;  %vm873_vm4 = vcmp.eq.f32.partialorder %v872_v9, 8.507059e+37 }
 0xc8d   :  { %v809_v17 = vor.u32 1.1754944e-38, %v808_v10  ;;  %vm807_vm8 = vcmp.eq.f32.partialorder %v806_v12, 8.507059e+37 }
 0xc90   :  { %v1509_v4 = vpop.eup %1508 }
 0xc91   :  { %v1511_v5 = vpop.eup %1510  ;;  %v864_v3 = vmul.f32 %v1509_v4, %v862_v38  ;;  %vm869_vm14 = vweird.f32 %v1509_v4 }
 0xc92   :  { %v798_v39 = vmul.f32 %v1511_v5, %v796_v1  ;;  %vm803_vm15 = vweird.f32 %v1511_v5  ;;  %vm870_vm2 = vmor %vm868_vm0, %vm869_vm14 }
 0xc93   :  { %v865_v7 = vsub.f32 1.0, %v864_v3  ;;  %vm804_vm5 = vmor %vm802_vm3, %vm803_vm15 }
 0xc94   :  { %v799_v42 = vsub.f32 1.0, %v798_v39 }
 0xc95   :  { %v866_v8 = vmul.f32 %v1509_v4, %v865_v7 }
 0xc96   :  { %v800_v11 = vmul.f32 %v1511_v5, %v799_v42 }
 0xc97   :  { %v867_v13 = vadd.f32 %v1509_v4, %v866_v8 }
 0xc98   :  { %v801_v15 = vadd.f32 %v1511_v5, %v800_v11 }
 0xc99   :  { %v871_v16 = vsel %vm870_vm2, %v1509_v4, %v867_v13 }
 0xc9a   :  { %v876_v18 = vsel %vm873_vm4, %v875_v14, %v871_v16  ;;  %v805_v19 = vsel %vm804_vm5, %v1511_v5, %v801_v15 }
 0xc9b   :  { %v878_v20 = vmul.f32 2.0, %v876_v18  ;;  %v810_v21 = vsel %vm807_vm8, %v809_v17, %v805_v19  ;;  %v880_v29 = vmul.f32 %v876_v18, %v1957_v54 }
 0xc9c   :  { %v812_v22 = vmul.f32 2.0, %v810_v21  ;;  %v814_v44 = vmul.f32 %v810_v21, %v1955_v50  ;;  %v68_v50 = vld [vmem:[%s2112_s0 + $0x30] sm:$0xff] }
 0xc9d   :  { %v1406_v23 = vadd.f32 -1.0, %v878_v20  ;;  %1373 = vmatmul.msk.f32.gmra.mxu0 %vm75_vm1, %v68_v50 }
 0xc9e   :  { %v1403_v24 = vadd.f32 -1.0, %v812_v22 }
 0xc9f   :  { %882 = vrot.lane.b32.xlu0 %v1406_v23, %s1631_s20 }
 0xca0   :  { %816 = vrot.lane.b32.xlu1 %v1403_v24, %s1631_s20 }
 0xd11   :  { %v883_v25 = vpop.permute.xlu0 %882 }
 0xd12   :  { %v885_v26 = vmul.f32 %v883_v25, %v876_v18  ;;  %v817_v27 = vpop.permute.xlu1 %816 }
 0xd13   :  { %v819_v28 = vmul.f32 %v817_v27, %v810_v21 }
 0xd14   :  { %887 = vrot.lane.b32.xlu2 %v885_v26, %s1631_s20 }
 0xd15   :  { %821 = vrot.lane.b32.xlu0 %v819_v28, %s1631_s20 }
 0xd1a   :  { %v139_v58 = vpop.f32.mrf.mxu0 }
 0xd1b   :  { %v140_v33 = vadd.f32 %v2011_v61, %v139_v58 }
 0xd6e   :  { %v888_v32 = vpop.permute.xlu2 %887 }
 0xd6f   :  { %v1986_v40 = vadd.f32 %v888_v32, %v880_v29 }
 0xd71   :  { %1512 = vtanh.f32 %v1986_v40 }
 0xd77   :  { %v1513_v41 = vpop.eup %1512 }
 0xd78   :  { %893 = vrot.lane.b32.xlu1 %v1513_v41, %s1631_s20 }
 0xd87   :  { %v822_v45 = vpop.permute.xlu0 %821 }
 0xd88   :  { %v1991_v49 = vadd.f32 %v822_v45, %v814_v44 }
 0xd8a   :  { %1514 = vtanh.f32 %v1991_v49 }
 0xd90   :  { %v1515_v53 = vpop.eup %1514 }
 0xd91   :  { %827 = vrot.lane.b32.xlu2 %v1515_v53, %s1631_s20 }
 0xdea   :  { %v894_v30 = vpop.permute.xlu1 %893 }
 0xdeb   :  { %v896_v54 = vmul.f32 %v894_v30, %v876_v18  ;;  %v828_v31 = vpop.permute.xlu2 %827 }
 0xdec   :  { %v1995_v55 = vmul.f32 %v828_v31, %v810_v21 }
 0xded   :  { %898 = vrot.lane.b32.xlu0 %v896_v54, %s1632_s15 }
 0xdee   :  { %901 = vrot.lane.b32.xlu1 %v1995_v55, %s1633_s1 }
 0xe5f   :  { %v899_v51 = vpop.permute.xlu0 %898 }
 0xe60   :  { %1410 = vmatmul.msk.f32.vlgmr.msrb.gmra.mxu3 %vm161_vm6, %v899_v51  ;;  %v902_v46 = vpop.permute.xlu1 %901 }
 0xe61   :  { %v904_v57 = vsel %vm161_vm6, %v899_v51, %v902_v46 }
 0xe62   :  { %1407 = vmatmul.msk.f32.vlgmr.msrb.gmra.mxu1 %vm229_vm7, %v904_v57 }
 0xedf   :  { %v925_v59 = vpop.f32.mrf.mxu1 }
 0xee0   :  { %v926_v60 = vadd.f32 %v1835_v48, %v925_v59 }
 0xee2   :  { %v1408_v62 = vmul.f32 -1.442695, %v926_v60 }
 0xee3   :  { %v990_v63 = vpop.f32.mrf.mxu3 }
 0xee4   :  { %1516 = vpow2.f32 %v1408_v62  ;;  %v993_v2 = vadd.f32 %v990_v63, %v140_v33 }
 0xee6   :  { %v1411_v34 = vmul.f32 -1.442695, %v993_v2 }
 0xee8   :  { %1518 = vpow2.f32 %v1411_v34 }
 0xeea   :  { %v1517_v35 = vpop.eup %1516 }
 0xeeb   :  { %v931_v36 = vadd.f32 1.0, %v1517_v35  ;;  %v2044_v35 = vld [vmem:[%s2117_s5] ss:$0 sm:$0xff] }
 0xeed   :  { %1520 = vrcp.f32 %v931_v36  ;;  %v941_v5 = vand.u32 2147483647, %v931_v36  ;;  %v943_v3 = vand.u32 2147483648, %v931_v36  ;;  %vm937_vm10 = vweird.f32 %v931_v36 }
 0xeee   :  { %v1519_v37 = vpop.eup %1518 }
 0xeef   :  { %v997_v0 = vadd.f32 1.0, %v1519_v37  ;;  %vm942_vm12 = vcmp.eq.f32.partialorder %v941_v5, 8.507059e+37  ;;  %v944_v8 = vor.u32 1.1754944e-38, %v943_v3 }
 0xef1   :  { %1522 = vrcp.f32 %v997_v0  ;;  %v1009_v9 = vand.u32 2147483648, %v997_v0  ;;  %v1007_v12 = vand.u32 2147483647, %v997_v0  ;;  %vm1003_vm14 = vweird.f32 %v997_v0 }
 0xef3   :  { %v1521_v48 = vpop.eup %1520  ;;  %v1010_v16 = vor.u32 1.1754944e-38, %v1009_v9  ;;  %vm1008_vm0 = vcmp.eq.f32.partialorder %v1007_v12, 8.507059e+37 }
 0xef4   :  { %v933_v38 = vmul.f32 %v1521_v48, %v931_v36  ;;  %vm938_vm9 = vweird.f32 %v1521_v48 }
 0xef5   :  { %vm939_vm11 = vmor %vm937_vm10, %vm938_vm9 }
 0xef6   :  { %v934_v1 = vsub.f32 1.0, %v933_v38 }
 0xef7   :  { %v1523_v4 = vpop.eup %1522 }
 0xef8   :  { %v999_v39 = vmul.f32 %v1523_v4, %v997_v0  ;;  %v935_v7 = vmul.f32 %v1521_v48, %v934_v1  ;;  %vm1004_vm13 = vweird.f32 %v1523_v4 }
 0xef9   :  { %vm1005_vm15 = vmor %vm1003_vm14, %vm1004_vm13 }
 0xefa   :  { %v1000_v42 = vsub.f32 1.0, %v999_v39  ;;  %v936_v6 = vadd.f32 %v1521_v48, %v935_v7 }
 0xefc   :  { %v940_v10 = vsel %vm939_vm11, %v1521_v48, %v936_v6  ;;  %v1001_v11 = vmul.f32 %v1523_v4, %v1000_v42 }
 0xefd   :  { %v945_v13 = vsel %vm942_vm12, %v944_v8, %v940_v10 }
 0xefe   :  { %v947_v14 = vmul.f32 2.0, %v945_v13  ;;  %v1002_v15 = vadd.f32 %v1523_v4, %v1001_v11  ;;  %v949_v26 = vmul.f32 %v945_v13, %v1991_v49 }
 0xf00   :  { %v1409_v17 = vadd.f32 -1.0, %v947_v14  ;;  %v1006_v18 = vsel %vm1005_vm15, %v1523_v4, %v1002_v15 }
 0xf01   :  { %v1011_v19 = vsel %vm1008_vm0, %v1010_v16, %v1006_v18 }
 0xf02   :  { %951 = vrot.lane.b32.xlu2 %v1409_v17, %s1631_s20  ;;  %v1013_v20 = vmul.f32 2.0, %v1011_v19  ;;  %v1015_v29 = vmul.f32 %v1011_v19, %v1986_v40  ;;  %v69_v40 = vld [vmem:[%s2112_s0 + $0x38] sm:$0xff] }
 0xf03   :  { %1374 = vmatmul.msk.f32.gmra.mxu0 %vm75_vm1, %v69_v40 }
 0xf04   :  { %v1412_v21 = vadd.f32 -1.0, %v1013_v20 }
 0xf06   :  { %1017 = vrot.lane.b32.xlu0 %v1412_v21, %s1631_s20 }
 0xf5c   :  { %v952_v22 = vpop.permute.xlu2 %951 }
 0xf5d   :  { %v954_v23 = vmul.f32 %v952_v22, %v945_v13 }
 0xf5f   :  { %956 = vrot.lane.b32.xlu1 %v954_v23, %s1631_s20 }
 0xf78   :  { %v1018_v24 = vpop.permute.xlu0 %1017 }
 0xf79   :  { %v1020_v25 = vmul.f32 %v1018_v24, %v1011_v19 }
 0xf7b   :  { %1022 = vrot.lane.b32.xlu2 %v1020_v25, %s1631_s20 }
 0xf80   :  { %v142_v46 = vpop.f32.mrf.mxu0 }
 0xf81   :  { %v143_v57 = vadd.f32 %v2011_v61, %v142_v46 }
 0xfd1   :  { %v957_v27 = vpop.permute.xlu1 %956 }
 0xfd2   :  { %v2019_v28 = vadd.f32 %v957_v27, %v949_v26 }
 0xfd4   :  { %1524 = vtanh.f32 %v2019_v28 }
 0xfd5   :  { %v1023_v32 = vpop.permute.xlu2 %1022 }
 0xfd6   :  { %v2023_v41 = vadd.f32 %v1023_v32, %v1015_v29 }
 0xfd8   :  { %1526 = vtanh.f32 %v2023_v41 }
 0xfda   :  { %v1525_v44 = vpop.eup %1524 }
 0xfdb   :  { %962 = vrot.lane.b32.xlu0 %v1525_v44, %s1631_s20 }
 0xfde   :  { %v1527_v45 = vpop.eup %1526 }
 0xfdf   :  { %1028 = vrot.lane.b32.xlu1 %v1527_v45, %s1631_s20 }
0x104d   :  { %v963_v53 = vpop.permute.xlu0 %962 }
0x104e   :  { %v2028_v49 = vmul.f32 %v963_v53, %v945_v13 }
0x1050   :  { %1036 = vrot.lane.b32.xlu0 %v2028_v49, %s1633_s1 }
0x1051   :  { %v1029_v30 = vpop.permute.xlu1 %1028 }
0x1052   :  { %v1031_v54 = vmul.f32 %v1029_v30, %v1011_v19 }
0x1054   :  { %1033 = vrot.lane.b32.xlu2 %v1031_v54, %s1632_s15 }
0x10ae   :  { %v1034_v31 = vpop.permute.xlu2 %1033 }
0x10af   :  { %1416 = vmatmul.msk.f32.vlgmr.msra.gmra.mxu3 %vm161_vm6, %v1034_v31 }
0x10c2   :  { %v1037_v50 = vpop.permute.xlu0 %1036 }
0x10c3   :  { %v1039_v51 = vsel %vm161_vm6, %v1034_v31, %v1037_v50 }
0x10c4   :  { %1413 = vmatmul.msk.f32.vlgmr.msrb.gmra.mxu2 %vm229_vm7, %v1039_v51 }
0x1132   :  { %v1125_v58 = vpop.f32.mrf.mxu3 }
0x1133   :  { %v1128_v59 = vadd.f32 %v1125_v58, %v143_v57 }
0x1135   :  { %v1417_v60 = vmul.f32 -1.442695, %v1128_v59 }
0x1137   :  { %1528 = vpow2.f32 %v1417_v60 }
0x113d   :  { %v1529_v33 = vpop.eup %1528 }
0x113e   :  { %v1132_v62 = vadd.f32 1.0, %v1529_v33 }
0x1140   :  { %1530 = vrcp.f32 %v1132_v62  ;;  %v1144_v61 = vand.u32 2147483648, %v1132_v62  ;;  %v1142_v38 = vand.u32 2147483647, %v1132_v62  ;;  %vm1138_vm2 = vweird.f32 %v1132_v62 }
0x1142   :  { %v1145_v4 = vor.u32 1.1754944e-38, %v1144_v61  ;;  %vm1143_vm4 = vcmp.eq.f32.partialorder %v1142_v38, 8.507059e+37  ;;  %v1259_v38 = vld [vmem:[#allocation6 + $0x10] sm:$0xff] }
0x1146   :  { %v1531_v63 = vpop.eup %1530 }
0x1147   :  { %v1134_v2 = vmul.f32 %v1531_v63, %v1132_v62  ;;  %v1060_v34 = vpop.f32.mrf.mxu2  ;;  %vm1139_vm1 = vweird.f32 %v1531_v63 }
0x1148   :  { %v1061_v36 = vadd.f32 %v2044_v35, %v1060_v34  ;;  %vm1140_vm3 = vmor %vm1138_vm2, %vm1139_vm1 }
0x1149   :  { %v1135_v37 = vsub.f32 1.0, %v1134_v2 }
0x114a   :  { %v1414_v0 = vmul.f32 -1.442695, %v1061_v36 }
0x114b   :  { %v1136_v48 = vmul.f32 %v1531_v63, %v1135_v37 }
0x114c   :  { %1532 = vpow2.f32 %v1414_v0 }
0x114d   :  { %v1137_v1 = vadd.f32 %v1531_v63, %v1136_v48  ;;  %v1260_v48 = vld [vmem:[#allocation6 + $0x18] sm:$0xff] }
0x114e   :  { %1431 = vmatpush.msrb.mxu3 %v1260_v48  ;;  %1301 = vmatpush.msra.mxu1 %v1260_v48 }
0x114f   :  { %v1141_v5 = vsel %vm1140_vm3, %v1531_v63, %v1137_v1  ;;  %v1258_v1 = vld [vmem:[#allocation6 + $0x8] sm:$0xff]  ;;  %1430 = vmatpush.msra.mxu2 %v1260_v48 }
0x1150   :  { %v1146_v3 = vsel %vm1143_vm4, %v1145_v4, %v1141_v5  ;;  %1433 = vmatpush.msrb.mxu3 %v1259_v38  ;;  %1302 = vmatpush.msra.mxu1 %v1259_v38  ;;  %v1257_v4 = vld [vmem:[#allocation6] sm:$0xff] }
0x1151   :  { %v1148_v39 = vmul.f32 2.0, %v1146_v3  ;;  %v1150_v24 = vmul.f32 %v1146_v3, %v2023_v41  ;;  %1432 = vmatpush.msra.mxu2 %v1259_v38 }
0x1152   :  { %v1533_v7 = vpop.eup %1532  ;;  %1435 = vmatpush.msrb.mxu3 %v1258_v1  ;;  %1303 = vmatpush.msra.mxu1 %v1258_v1 }
0x1153   :  { %v1066_v42 = vadd.f32 1.0, %v1533_v7  ;;  %v1418_v6 = vadd.f32 -1.0, %v1148_v39  ;;  %1434 = vmatpush.msra.mxu2 %v1258_v1 }
0x1154   :  { %1437 = vmatpush.msrb.mxu3 %v1257_v4  ;;  %1304 = vmatpush.msra.mxu1 %v1257_v4 }
0x1155   :  { %1534 = vrcp.f32 %v1066_v42  ;;  %1152 = vrot.lane.b32.xlu2 %v1418_v6, %s1631_s20  ;;  %v1078_v11 = vand.u32 2147483648, %v1066_v42  ;;  %v1076_v13 = vand.u32 2147483647, %v1066_v42  ;;  %vm1072_vm8 = vweird.f32 %v1066_v42  ;;  %1436 = vmatpush.msra.mxu2 %v1257_v4 }
0x1157   :  { %v1079_v15 = vor.u32 1.1754944e-38, %v1078_v11  ;;  %vm1077_vm10 = vcmp.eq.f32.partialorder %v1076_v13, 8.507059e+37 }
0x115b   :  { %v1535_v8 = vpop.eup %1534 }
0x115c   :  { %v1068_v9 = vmul.f32 %v1535_v8, %v1066_v42  ;;  %vm1073_vm5 = vweird.f32 %v1535_v8 }
0x115d   :  { %vm1074_vm9 = vmor %vm1072_vm8, %vm1073_vm5 }
0x115e   :  { %v1069_v10 = vsub.f32 1.0, %v1068_v9 }
0x1160   :  { %v1070_v12 = vmul.f32 %v1535_v8, %v1069_v10 }
0x1162   :  { %v1071_v14 = vadd.f32 %v1535_v8, %v1070_v12 }
0x1164   :  { %v1075_v16 = vsel %vm1074_vm9, %v1535_v8, %v1071_v14 }
0x1165   :  { %v1080_v17 = vsel %vm1077_vm10, %v1079_v15, %v1075_v16 }
0x1166   :  { %v1082_v18 = vmul.f32 2.0, %v1080_v17  ;;  %v1084_v29 = vmul.f32 %v1080_v17, %v2019_v28 }
0x1168   :  { %v1415_v19 = vadd.f32 -1.0, %v1082_v18 }
0x116a   :  { %1086 = vrot.lane.b32.xlu1 %v1415_v19, %s1631_s20 }
0x11af   :  { %v1153_v20 = vpop.permute.xlu2 %1152 }
0x11b0   :  { %v1155_v21 = vmul.f32 %v1153_v20, %v1146_v3 }
0x11b2   :  { %1157 = vrot.lane.b32.xlu1 %v1155_v21, %s1631_s20 }
0x11dc   :  { %v1087_v22 = vpop.permute.xlu1 %1086 }
0x11dd   :  { %v1089_v23 = vmul.f32 %v1087_v22, %v1080_v17 }
0x11df   :  { %1091 = vrot.lane.b32.xlu0 %v1089_v23, %s1631_s20 }
0x1224   :  { %v1158_v25 = vpop.permute.xlu1 %1157 }
0x1225   :  { %v1160_v26 = vadd.f32 %v1158_v25, %v1150_v24 }
0x1227   :  { %1536 = vtanh.f32 %v1160_v26 }
0x122d   :  { %v1537_v27 = vpop.eup %1536 }
0x122e   :  { %1163 = vrot.lane.b32.xlu0 %v1537_v27, %s1631_s20 }
0x1251   :  { %v1092_v32 = vpop.permute.xlu0 %1091 }
0x1252   :  { %v2054_v44 = vadd.f32 %v1092_v32, %v1084_v29 }
0x1254   :  { %1538 = vtanh.f32 %v2054_v44 }
0x125a   :  { %v1539_v45 = vpop.eup %1538 }
0x125b   :  { %1097 = vrot.lane.b32.xlu2 %v1539_v45, %s1631_s20 }
0x12a0   :  { %v1164_v53 = vpop.permute.xlu0 %1163 }
0x12a1   :  { %v1166_v30 = vmul.f32 %v1164_v53, %v1146_v3 }
0x12a3   :  { %1168 = vrot.lane.b32.xlu1 %v1166_v30, %s1632_s15 }
0x12b5   :  { %v1098_v41 = vpop.permute.xlu2 %1097 }
0x12b6   :  { %v1100_v54 = vmul.f32 %v1098_v41, %v1080_v17  ;;  %v1449_v17 = vld [vmem:[%s2119_s7] ss:$0 sm:$0xff]  ;;  %s1634_s7 = smov [#allocation8]  }
0x12b7   :  { %s1350_s12 = sshll.u32 %s1634_s7, 4  ;;  %s1351_s12 = int_to_ptr.vmem [resolvable:$true] %s1350_s12 }
0x12b8   :  { %1171 = vrot.lane.b32.xlu2 %v1100_v54, %s1633_s1 }
0x1312   :  { %v1172_v40 = vpop.permute.xlu2 %1171 }
0x1315   :  { %v1169_v31 = vpop.permute.xlu1 %1168 }
0x1316   :  { %v1174_v28 = vsel %vm161_vm6, %v1169_v31, %v1172_v40 }
0x1317   :  { %1419 = vmatmul.msk.f32.vlgmr.msrb.gmra.mxu0 %vm229_vm7, %v1174_v28 }
0x1394   :  { %v1195_v50 = vpop.f32.mrf.mxu0 }
0x1395   :  { %v1196_v51 = vadd.f32 %v2044_v35, %v1195_v50 }
0x1397   :  { %v1420_v46 = vmul.f32 -1.442695, %v1196_v51 }
0x1399   :  { %1540 = vpow2.f32 %v1420_v46 }
0x139f   :  { %v1541_v57 = vpop.eup %1540 }
0x13a0   :  { %v1201_v58 = vadd.f32 1.0, %v1541_v57 }
0x13a2   :  { %1542 = vrcp.f32 %v1201_v58  ;;  %v1213_v62 = vand.u32 2147483648, %v1201_v58  ;;  %v1211_v2 = vand.u32 2147483647, %v1201_v58  ;;  %vm1207_vm12 = vweird.f32 %v1201_v58 }
0x13a4   :  { %v1214_v36 = vor.u32 1.1754944e-38, %v1213_v62  ;;  %vm1212_vm7 = vcmp.eq.f32.partialorder %v1211_v2, 8.507059e+37 }
0x13a8   :  { %v1543_v59 = vpop.eup %1542 }
0x13a9   :  { %v1203_v60 = vmul.f32 %v1543_v59, %v1201_v58  ;;  %vm1208_vm11 = vweird.f32 %v1543_v59 }
0x13aa   :  { %vm1209_vm13 = vmor %vm1207_vm12, %vm1208_vm11 }
0x13ab   :  { %v1204_v33 = vsub.f32 1.0, %v1203_v60 }
0x13ad   :  { %v1205_v63 = vmul.f32 %v1543_v59, %v1204_v33 }
0x13af   :  { %v1206_v34 = vadd.f32 %v1543_v59, %v1205_v63 }
0x13b1   :  { %v1210_v37 = vsel %vm1209_vm13, %v1543_v59, %v1206_v34 }
0x13b2   :  { %v2063_v0 = vsel %vm1212_vm7, %v1214_v36, %v1210_v37 }
0x13b3   :  { %v1217_v35 = vmul.f32 2.0, %v2063_v0 }
0x13b5   :  { %v1421_v61 = vadd.f32 -1.0, %v1217_v35 }
0x13b7   :  { %1221 = vrot.lane.b32.xlu0 %v1421_v61, %s1631_s20 }
0x13bf   :  { %967 = vrot.lane.b32.xlu0 %v2028_v49, %s1632_s15 }
0x13c7   :  { %1102 = vrot.lane.b32.xlu0 %v1100_v54, %s1632_s15 }
0x1429   :  { %v1222_v5 = vpop.permute.xlu0 %1221 }
0x142a   :  { %v1224_v49 = vmul.f32 %v1222_v5, %v2063_v0 }
0x142c   :  { %1226 = vrot.lane.b32.xlu1 %v1224_v49, %s1631_s20 }
0x1431   :  { %v968_v3 = vpop.permute.xlu0 %967 }
0x1432   :  { %970 = vst.msk [vmem:[#allocation2 + $0x28] sm:$0xff] %vm161_vm6, %v968_v3 }
0x1434   :  { %292 = vrot.lane.b32.xlu1 %v1852_v47, %s1632_s15  ;;  %v1219_v47 = vmul.f32 %v2063_v0, %v2054_v44 }
0x1439   :  { %v1103_v39 = vpop.permute.xlu0 %1102  ;;  %v1246_v7 = vld [vmem:[#allocation2 + $0x28] sm:$0xff] }
0x143a   :  { %1105 = vst.msk [vmem:[#allocation2 + $0x30] sm:$0xff] %vm161_vm6, %v1103_v39  ;;  %v1254_v42 = vmax.f32 %v1246_v7, 0.0 }
0x143c   :  { %427 = vrot.lane.b32.xlu1 %v1892_v56, %s1632_s15  ;;  %1427 = vmatmul.msk.f32.vlgmr.msrb.gmra.mxu3 %vm161_vm6, %v1254_v42 }
0x1441   :  { %v1247_v6 = vld [vmem:[#allocation2 + $0x30] sm:$0xff] }
0x1442   :  { %v1255_v8 = vmax.f32 %v1247_v6, 0.0 }
0x1444   :  { %562 = vrot.lane.b32.xlu1 %v1932_v43, %s1632_s15  ;;  %1428 = vmatmul.msk.f32.gmra.mxu3 %vm161_vm6, %v1255_v8 }
0x149e   :  { %v1227_v9 = vpop.permute.xlu1 %1226 }
0x149f   :  { %v1229_v10 = vadd.f32 %v1227_v9, %v1219_v47 }
0x14a1   :  { %1544 = vtanh.f32 %v1229_v10 }
0x14a6   :  { %v293_v11 = vpop.permute.xlu1 %292 }
0x14a7   :  { %v1545_v12 = vpop.eup %1544  ;;  %295 = vst.msk [vmem:[#allocation2] sm:$0xff] %vm161_vm6, %v293_v11 }
0x14a8   :  { %1232 = vrot.lane.b32.xlu2 %v1545_v12, %s1631_s20 }
0x14ae   :  { %v428_v56 = vpop.permute.xlu1 %427  ;;  %v1241_v13 = vld [vmem:[#allocation2] sm:$0xff] }
0x14af   :  { %430 = vst.msk [vmem:[#allocation2 + $0x8] sm:$0xff] %vm161_vm6, %v428_v56  ;;  %v1249_v14 = vmax.f32 %v1241_v13, 0.0 }
0x14b0   :  { %697 = vrot.lane.b32.xlu2 %v1964_v52, %s1632_s15 }
0x14b1   :  { %1422 = vmatmul.msk.f32.vlgmr.msra.gmra.mxu1 %vm161_vm6, %v1249_v14 }
0x14b6   :  { %v563_v43 = vpop.permute.xlu1 %562  ;;  %v1242_v15 = vld [vmem:[#allocation2 + $0x8] sm:$0xff] }
0x14b7   :  { %565 = vst.msk [vmem:[#allocation2 + $0x10] sm:$0xff] %vm161_vm6, %v563_v43  ;;  %v1250_v16 = vmax.f32 %v1242_v15, 0.0 }
0x14b8   :  { %832 = vrot.lane.b32.xlu2 %v1995_v55, %s1632_s15 }
0x14b9   :  { %1423 = vmatmul.msk.f32.gmra.mxu1 %vm161_vm6, %v1250_v16 }
0x14be   :  { %v1243_v18 = vld [vmem:[#allocation2 + $0x10] sm:$0xff] }
0x14bf   :  { %v1321_v19 = vpop.f32.mrf.mxu3  ;;  %v1251_v20 = vmax.f32 %v1243_v18, 0.0 }
0x14c0   :  { %v1322_v52 = vadd.f32 %v1449_v17, %v1321_v19 }
0x14c1   :  { %1424 = vmatmul.msk.f32.gmra.mxu1 %vm161_vm6, %v1251_v20 }
0x14c2   :  { %v1335_v21 = vmax.f32 %v1322_v52, 0.0 }
0x14c4   :  { %1343 = vst [vmem:[#allocation8 + $0x28] sm:$0xff] %v1335_v21 }
0x14c7   :  { %v1324_v22 = vpop.f32.mrf.mxu3 }
0x14c8   :  { %v1325_v23 = vadd.f32 %v1449_v17, %v1324_v22 }
0x14ca   :  { %v1336_v24 = vmax.f32 %v1325_v23, 0.0 }
0x14cc   :  { %1344 = vst [vmem:[#allocation8 + $0x30] sm:$0xff] %v1336_v24 }
0x1502   :  { %v1233_v25 = vpop.permute.xlu2 %1232 }
0x1503   :  { %v1235_v55 = vmul.f32 %v1233_v25, %v2063_v0 }
0x1505   :  { %1237 = vrot.lane.b32.xlu0 %v1235_v55, %s1632_s15 }
0x150a   :  { %v698_v26 = vpop.permute.xlu2 %697 }
0x150b   :  { %700 = vst.msk [vmem:[#allocation2 + $0x18] sm:$0xff] %vm161_vm6, %v698_v26 }
0x1512   :  { %v833_v27 = vpop.permute.xlu2 %832  ;;  %v1244_v29 = vld [vmem:[#allocation2 + $0x18] sm:$0xff] }
0x1513   :  { %835 = vst.msk [vmem:[#allocation2 + $0x20] sm:$0xff] %vm161_vm6, %v833_v27  ;;  %v1252_v32 = vmax.f32 %v1244_v29, 0.0 }
0x1515   :  { %1425 = vmatmul.msk.f32.vlgmr.msra.gmra.mxu2 %vm161_vm6, %v1252_v32 }
0x151a   :  { %v1245_v44 = vld [vmem:[#allocation2 + $0x20] sm:$0xff] }
0x151b   :  { %v1253_v45 = vmax.f32 %v1245_v44, 0.0 }
0x151d   :  { %1426 = vmatmul.msk.f32.gmra.mxu2 %vm161_vm6, %v1253_v45 }
0x152e   :  { %v1306_v53 = vpop.f32.mrf.mxu1 }
0x152f   :  { %v1307_v30 = vadd.f32 %v1449_v17, %v1306_v53 }
0x1531   :  { %v1330_v41 = vmax.f32 %v1307_v30, 0.0 }
0x1533   :  { %1338 = vst [vmem:[#allocation8] sm:$0xff] %v1330_v41 }
0x1536   :  { %v1309_v54 = vpop.f32.mrf.mxu1 }
0x1537   :  { %v1310_v40 = vadd.f32 %v1449_v17, %v1309_v54 }
0x1539   :  { %v1331_v31 = vmax.f32 %v1310_v40, 0.0 }
0x153b   :  { %1339 = vst [vmem:[#allocation8 + $0x8] sm:$0xff] %v1331_v31 }
0x153e   :  { %v1312_v28 = vpop.f32.mrf.mxu1 }
0x153f   :  { %v1313_v50 = vadd.f32 %v1449_v17, %v1312_v28 }
0x1541   :  { %v1332_v51 = vmax.f32 %v1313_v50, 0.0 }
0x1543   :  { %1340 = vst [vmem:[#allocation8 + $0x10] sm:$0xff] %v1332_v51 }
0x1577   :  { %v1238_v46 = vpop.permute.xlu0 %1237 }
0x1578   :  { %1240 = vst.msk [vmem:[#allocation2 + $0x38] sm:$0xff] %vm161_vm6, %v1238_v46 }
0x157f   :  { %v1248_v57 = vld [vmem:[#allocation2 + $0x38] sm:$0xff] }
0x1580   :  { %v1256_v58 = vmax.f32 %v1248_v57, 0.0 }
0x1582   :  { %1429 = vmatmul.msk.f32.gmra.mxu3 %vm161_vm6, %v1256_v58 }
0x1598   :  { %v1315_v59 = vpop.f32.mrf.mxu2 }
0x1599   :  { %v1316_v60 = vadd.f32 %v1449_v17, %v1315_v59 }
0x159b   :  { %v1333_v33 = vmax.f32 %v1316_v60, 0.0 }
0x159d   :  { %1341 = vst [vmem:[#allocation8 + $0x18] sm:$0xff] %v1333_v33 }
0x15a0   :  { %v1318_v62 = vpop.f32.mrf.mxu2 }
0x15a1   :  { %v1319_v63 = vadd.f32 %v1449_v17, %v1318_v62 }
0x15a3   :  { %v1334_v2 = vmax.f32 %v1319_v63, 0.0 }
0x15a5   :  { %1342 = vst [vmem:[#allocation8 + $0x20] sm:$0xff] %v1334_v2 }
0x1605   :  { %v1327_v34 = vpop.f32.mrf.mxu3 }
0x1606   :  { %v1328_v36 = vadd.f32 %v1449_v17, %v1327_v34 }
0x1608   :  { %v1337_v37 = vmax.f32 %v1328_v36, 0.0 }
0x160a   :  { %1345 = vst [vmem:[#allocation8 + $0x38] sm:$0xff] %v1337_v37 }
0x160b   :  { %1358 = dma.vmem_to_hbm [thread:$0]  %s1351_s12, 1024, %s1353_s2, [#allocation5], %s1627_s13, %s1627_s13, %s1628_s14  }
0x160c   :  { %1624 = dma.done.wait [#allocation5], 1024  }
0x160d   :  { %1625 = vsyncadd [#allocation5], 4294966272 }
0x160e   :  { %1363 = vsyncpa [#allocation4], 1 }
0x160f   :  { %1364 = vsyncpa [#allocation7], 1 }
0x1610   :  { %1365 = vsyncpa [#allocation5], 1 }

</bundles_post_ra>
